<compile_context>
chip_gen: v6e
topology: v6e:2x2x1
jax: 0.10.0
libtpu: 0.0.40
codegen_flags: <defaults>
</compile_context>

<pallas_src>
import numpy as np

import jax
import jax.numpy as jnp
from jax.experimental import pallas as pl
from jax.experimental.pallas import tpu as pltpu


# ----------------------------------------------------------------------------
# Geometry helpers
# ----------------------------------------------------------------------------
def _out_dim(x):
    # Conv2d(kernel=3, stride=2, pad=1) output size.
    return (x - 1) // 2 + 1


def _layer_geometry(n, h, w, c0, params):
    geo = []
    hi, wi, cin = h, w, c0
    for (wc, *_rest) in params:
        cout = int(wc.shape[0])
        ho, wo = _out_dim(hi), _out_dim(wi)
        geo.append(dict(hi=hi, wi=wi, cin=cin, ho=ho, wo=wo, cout=cout,
                        hb=ho + 1,            # parity-split row blocks of this layer's input
                        k=n * wi * cin,       # matmul K (lanes of this layer's input)
                        m=n * wo * cout))     # matmul N (lanes of this layer's output)
        hi, wi, cin = ho, wo, cout
    return geo


# ----------------------------------------------------------------------------
# Pallas kernel: the whole encoder (all conv+BN+ReLU layers) in one call.
#
# Activation layout (input ref and inter-layer scratch refs), per layer:
#   shape (2, HB, N*Wi*Cin) bf16, where slot [p, q, n*Wi*Cin + s*Cin + ci]
#   holds padded image row r = 2q + p (content rows are r = 1..Hi, the rest is
#   the zero border).  Output row i, tap kh then needs padded row 2i+kh, i.e.
#   parity p = kh%2, contiguous blocks q = kh//2 .. kh//2 + Ho  ->  a plain
#   unit-stride slice per kh.
# ----------------------------------------------------------------------------
def _make_encoder_kernel(geo):
    n_layers = len(geo)

    def kernel(*refs):
        # refs = (x1, T1, scale1, shift1, ..., TL, scaleL, shiftL, out, a2..aL)
        out_ref = refs[1 + 3 * n_layers]
        scratch = refs[2 + 3 * n_layers:]

        a_ref = refs[0]                                  # (2, HB1, K1) bf16
        for l in range(n_layers):
            t_ref = refs[1 + 3 * l]                      # (3, K_l, M_l) bf16 block-Toeplitz
            sc_ref = refs[2 + 3 * l]                     # (1, M_l) f32 BN scale
            sh_ref = refs[3 + 3 * l]                     # (1, M_l) f32 BN shift
            ho, m = geo[l]['ho'], geo[l]['m']

            # 3x3/stride-2 conv == 3 matmuls: kh is a row-parity slice, the kw
            # taps + channel contraction + W border live in the Toeplitz weight.
            acc = jnp.zeros((ho, m), jnp.float32)
            for kh in range(3):
                rows = a_ref[kh % 2, pl.ds(kh // 2, ho), :]          # (Ho, K_l) bf16
                acc = acc + jnp.dot(rows, t_ref[kh],
                                    preferred_element_type=jnp.float32)

            # Eval-mode BN + ReLU epilogue in f32 (scale kept out of bf16 weights).
            y = jnp.maximum(acc * sc_ref[...] + sh_ref[...], 0.0)

            if l == n_layers - 1:
                out_ref[...] = y.astype(out_ref.dtype)   # lane-dense 128-wide store
            else:
                nxt = scratch[l]                         # (2, HB_{l+1}, M_l) bf16
                hb_n = geo[l + 1]['hb']
                # zero-init == the next layer's spatial zero border
                nxt[...] = jnp.zeros((2, hb_n, m), jnp.bfloat16)
                y_bf = y.astype(jnp.bfloat16)
                for hrow in range(ho):                   # scatter rows into parity-split layout
                    p, q = (hrow + 1) % 2, (hrow + 1) // 2
                    nxt[p, pl.ds(q, 1), :] = y_bf[hrow:hrow + 1, :]
                a_ref = nxt                              # next layer reads straight from VMEM

    return kernel


# ----------------------------------------------------------------------------
# Wrapper-side constant builders
# ----------------------------------------------------------------------------
def _toeplitz_weight(w_oihw, n_img, wi, wo):
    """(3, N*Wi*Cin, N*Wo*Cout) bf16 block-Toeplitz weight.

    T[kh, n*Wi*Cin + s*Cin + ci, n*Wo*Cout + j*Cout + co] = W[co, ci, kh, kw]
    with kw = s - 2*j + 1 when that lies in [0, 3), zero otherwise and zero
    across images (block-diagonal), so images stacked along lanes never mix.
    The W-direction zero border is handled simply by s only ranging over real
    columns.  BN scale is *not* folded here (applied in the f32 epilogue).
    """
    c_out, c_in = int(w_oihw.shape[0]), int(w_oihw.shape[1])
    s_idx = np.arange(wi)[:, None, None]
    j_idx = np.arange(wo)[None, :, None]
    k_idx = np.arange(3)[None, None, :]
    place = jnp.asarray((s_idx == 2 * j_idx + k_idx - 1).astype(np.float32))  # (Wi, Wo, 3)
    w_t = jnp.transpose(w_oihw, (2, 3, 1, 0)).astype(jnp.float32)             # (kh, kw, ci, co)
    t = jnp.einsum('sjw,hwic->hsijc', place, w_t)                             # (3, Wi, Cin, Wo, Cout)
    t = t.reshape(3, wi * c_in, wo * c_out)
    eye = jnp.eye(n_img, dtype=t.dtype)
    t = jnp.einsum('ab,hkm->hakbm', eye, t).reshape(
        3, n_img * wi * c_in, n_img * wo * c_out)
    return t.astype(jnp.bfloat16)


def _prep_input(x_nchw, hb1):
    """NCHW -> parity-split, H-padded, lane-stacked layout (2, HB1, N*W*C) bf16."""
    n, c, h, w = map(int, x_nchw.shape)
    x = jnp.transpose(x_nchw, (0, 2, 3, 1))                         # NHWC
    pad_after = 2 * hb1 - 1 - h
    x = jnp.pad(x, ((0, 0), (1, pad_after), (0, 0), (0, 0)))        # (N, 2*HB1, W, C)
    x = jnp.transpose(x, (1, 0, 2, 3)).reshape(hb1, 2, n * w * c)   # row r = 2q + p
    return jnp.transpose(x, (1, 0, 2)).astype(jnp.bfloat16)         # (2, HB1, N*W*C)


# ----------------------------------------------------------------------------
# Full Encoder forward: NCHW in / NCHW out, single fused pallas_call
# ----------------------------------------------------------------------------
def encoder_forward(x_nchw, params, eps=1e-5):
    n, c0, h0, w0 = map(int, x_nchw.shape)
    geo = _layer_geometry(n, h0, w0, c0, params)

    inputs = [_prep_input(x_nchw, geo[0]['hb'])]
    for g, (wc, gamma, beta, mean, var) in zip(geo, params):
        t = _toeplitz_weight(wc, n, g['wi'], g['wo'])
        scale = gamma * jax.lax.rsqrt(var + eps)
        shift = beta - mean * scale
        # Output lane order is (image, out_col, out_channel) -> repeat per channel.
        sc_row = jnp.tile(scale, n * g['wo']).reshape(1, g['m']).astype(jnp.float32)
        sh_row = jnp.tile(shift, n * g['wo']).reshape(1, g['m']).astype(jnp.float32)
        inputs += [t, sc_row, sh_row]

    gl = geo[-1]
    out = pl.pallas_call(
        _make_encoder_kernel(geo),
        out_shape=jax.ShapeDtypeStruct((gl['ho'], gl['m']), jnp.bfloat16),
        in_specs=[pl.BlockSpec(memory_space=pltpu.MemorySpace.VMEM)] * len(inputs),
        out_specs=pl.BlockSpec(memory_space=pltpu.MemorySpace.VMEM),
        scratch_shapes=[pltpu.VMEM((2, geo[l]['hb'], geo[l]['k']), jnp.bfloat16)
                        for l in range(1, len(geo))],
    )(*inputs)

    # Lanes are ordered (image, out_col, out_channel); restore NCHW in f32.
    y = out.astype(jnp.float32).reshape(gl['ho'], n, gl['wo'], gl['cout'])
    return jnp.transpose(y, (1, 3, 0, 2))


# ----------------------------------------------------------------------------
# Pure-JAX reference (same eval-mode BN semantics) for correctness checking
# ----------------------------------------------------------------------------
def encoder_reference(x_nchw, params, eps=1e-5):
    x = jnp.transpose(x_nchw, (0, 2, 3, 1))
    for (wc, gamma, beta, mean, var) in params:
        y = jax.lax.conv_general_dilated(
            x, jnp.transpose(wc, (2, 3, 1, 0)),                # OIHW -> HWIO
            window_strides=(2, 2), padding=((1, 1), (1, 1)),
            dimension_numbers=("NHWC", "HWIO", "NHWC"))
        scale = gamma / jnp.sqrt(var + eps)
        shift = beta - mean * scale
        x = jnp.maximum(y * scale + shift, 0.0)
    return jnp.transpose(x, (0, 3, 1, 2))


def init_params(key, out_nc=64):
    # Mirrors Encoder.__init__ channel progression: 3 -> nc -> 2nc -> 4nc -> 8nc
    nc = out_nc // 2 ** 3
    chans = [(3, nc), (nc, 2 * nc), (2 * nc, 4 * nc), (4 * nc, 8 * nc)]
    params = []
    for li, (cin, cout) in enumerate(chans):
        k = jax.random.fold_in(key, li)
        kw_, kg, kb, km, kv = jax.random.split(k, 5)
        wt = jax.random.normal(kw_, (cout, cin, 3, 3), jnp.float32) * 0.1
        gamma = 1.0 + 0.1 * jax.random.normal(kg, (cout,), jnp.float32)
        beta = 0.1 * jax.random.normal(kb, (cout,), jnp.float32)
        mean = 0.1 * jax.random.normal(km, (cout,), jnp.float32)
        var = 1.0 + 0.1 * jax.nn.softplus(jax.random.normal(kv, (cout,), jnp.float32))
        params.append((wt, gamma, beta, mean, var))
    return params


if __name__ == "__main__":
    key = jax.random.PRNGKey(0)
    out_nc = 64  # small: channels 3 -> 8 -> 16 -> 32 -> 64
    params = init_params(key, out_nc=out_nc)

    x = jax.random.normal(jax.random.fold_in(key, 12345), (2, 3, 16, 16), jnp.float32)

    y = jax.block_until_ready(encoder_forward(x, params))
    assert y.shape == (2, out_nc, 1, 1), y.shape

    y_ref = jax.block_until_ready(encoder_reference(x, params))
    err = float(jnp.max(jnp.abs(y - y_ref)))
    ref_mag = float(jnp.max(jnp.abs(y_ref))) + 1e-6
    # bf16 matmul operands / bf16 output => small relative tolerance vs f32 ref.
    assert err <= 5e-2 * ref_mag + 2e-2, f"max abs err {err} vs ref magnitude {ref_mag}"

    print("KERNEL_OK")
</pallas_src>

<mosaic_0001>
module attributes {stable_mosaic.version = 11 : i64} {
  func.func @kernel(%arg0: memref<2x9x96xbf16, #tpu.memory_space<vmem>>, %arg1: memref<3x96x128xbf16, #tpu.memory_space<vmem>>, %arg2: memref<1x128xf32, #tpu.memory_space<vmem>>, %arg3: memref<1x128xf32, #tpu.memory_space<vmem>>, %arg4: memref<3x128x128xbf16, #tpu.memory_space<vmem>>, %arg5: memref<1x128xf32, #tpu.memory_space<vmem>>, %arg6: memref<1x128xf32, #tpu.memory_space<vmem>>, %arg7: memref<3x128x128xbf16, #tpu.memory_space<vmem>>, %arg8: memref<1x128xf32, #tpu.memory_space<vmem>>, %arg9: memref<1x128xf32, #tpu.memory_space<vmem>>, %arg10: memref<3x128x128xbf16, #tpu.memory_space<vmem>>, %arg11: memref<1x128xf32, #tpu.memory_space<vmem>>, %arg12: memref<1x128xf32, #tpu.memory_space<vmem>>, %arg13: memref<1x128xbf16, #tpu.memory_space<vmem>>, %arg14: memref<2x5x128xbf16, #tpu.memory_space<vmem>>, %arg15: memref<2x3x128xbf16, #tpu.memory_space<vmem>>, %arg16: memref<2x2x128xbf16, #tpu.memory_space<vmem>>) attributes {dimension_semantics = [], scalar_prefetch = 0 : i64, scratch_operands = 3 : i64, tpu.core_type = #tpu.core_type<tc>} {
    %cst = arith.constant 0.000000e+00 : f32
    %0 = vector.broadcast %cst : f32 to vector<8x128xf32>
    %c0 = arith.constant 0 : index
    %c0_0 = arith.constant 0 : index
    %c0_1 = arith.constant 0 : index
    %1 = vector.load %arg0[%c0, %c0_0, %c0_1] : memref<2x9x96xbf16, #tpu.memory_space<vmem>>, vector<1x8x96xbf16>
    %2 = vector.shape_cast %1 : vector<1x8x96xbf16> to vector<8x96xbf16>
    %c0_2 = arith.constant 0 : index
    %c0_3 = arith.constant 0 : index
    %c0_4 = arith.constant 0 : index
    %3 = vector.load %arg1[%c0_2, %c0_3, %c0_4] : memref<3x96x128xbf16, #tpu.memory_space<vmem>>, vector<1x96x128xbf16>
    %4 = vector.shape_cast %3 : vector<1x96x128xbf16> to vector<96x128xbf16>
    %cst_5 = arith.constant dense<0.000000e+00> : vector<8x128xf32>
    %5 = tpu.matmul %2, %4, %cst_5 {dimension_numbers = #tpu.dot_dimension_numbers<[1], [0], [0], [1], [0, 0, 1, 1], [], []>} : vector<8x96xbf16>, vector<96x128xbf16>, vector<8x128xf32> -> vector<8x128xf32>
    %6 = arith.addf %0, %5 : vector<8x128xf32>
    %c1 = arith.constant 1 : index
    %c0_6 = arith.constant 0 : index
    %c0_7 = arith.constant 0 : index
    %7 = vector.load %arg0[%c1, %c0_6, %c0_7] : memref<2x9x96xbf16, #tpu.memory_space<vmem>>, vector<1x8x96xbf16>
    %8 = vector.shape_cast %7 : vector<1x8x96xbf16> to vector<8x96xbf16>
    %c1_8 = arith.constant 1 : index
    %c0_9 = arith.constant 0 : index
    %c0_10 = arith.constant 0 : index
    %9 = vector.load %arg1[%c1_8, %c0_9, %c0_10] : memref<3x96x128xbf16, #tpu.memory_space<vmem>>, vector<1x96x128xbf16>
    %10 = vector.shape_cast %9 : vector<1x96x128xbf16> to vector<96x128xbf16>
    %cst_11 = arith.constant dense<0.000000e+00> : vector<8x128xf32>
    %11 = tpu.matmul %8, %10, %cst_11 {dimension_numbers = #tpu.dot_dimension_numbers<[1], [0], [0], [1], [0, 0, 1, 1], [], []>} : vector<8x96xbf16>, vector<96x128xbf16>, vector<8x128xf32> -> vector<8x128xf32>
    %12 = arith.addf %6, %11 : vector<8x128xf32>
    %c0_12 = arith.constant 0 : index
    %c1_13 = arith.constant 1 : index
    %c0_14 = arith.constant 0 : index
    %13 = vector.load %arg0[%c0_12, %c1_13, %c0_14] : memref<2x9x96xbf16, #tpu.memory_space<vmem>>, vector<1x8x96xbf16>
    %14 = vector.shape_cast %13 : vector<1x8x96xbf16> to vector<8x96xbf16>
    %c2 = arith.constant 2 : index
    %c0_15 = arith.constant 0 : index
    %c0_16 = arith.constant 0 : index
    %15 = vector.load %arg1[%c2, %c0_15, %c0_16] : memref<3x96x128xbf16, #tpu.memory_space<vmem>>, vector<1x96x128xbf16>
    %16 = vector.shape_cast %15 : vector<1x96x128xbf16> to vector<96x128xbf16>
    %cst_17 = arith.constant dense<0.000000e+00> : vector<8x128xf32>
    %17 = tpu.matmul %14, %16, %cst_17 {dimension_numbers = #tpu.dot_dimension_numbers<[1], [0], [0], [1], [0, 0, 1, 1], [], []>} : vector<8x96xbf16>, vector<96x128xbf16>, vector<8x128xf32> -> vector<8x128xf32>
    %18 = arith.addf %12, %17 : vector<8x128xf32>
    %c0_18 = arith.constant 0 : index
    %c0_19 = arith.constant 0 : index
    %19 = vector.load %arg2[%c0_18, %c0_19] : memref<1x128xf32, #tpu.memory_space<vmem>>, vector<1x128xf32>
    %20 = vector.broadcast %19 : vector<1x128xf32> to vector<8x128xf32>
    %21 = arith.mulf %18, %20 : vector<8x128xf32>
    %c0_20 = arith.constant 0 : index
    %c0_21 = arith.constant 0 : index
    %22 = vector.load %arg3[%c0_20, %c0_21] : memref<1x128xf32, #tpu.memory_space<vmem>>, vector<1x128xf32>
    %23 = vector.broadcast %22 : vector<1x128xf32> to vector<8x128xf32>
    %24 = arith.addf %21, %23 : vector<8x128xf32>
    %cst_22 = arith.constant 0.000000e+00 : f32
    %25 = vector.broadcast %cst_22 : f32 to vector<8x128xf32>
    %26 = arith.maximumf %24, %25 : vector<8x128xf32>
    %cst_23 = arith.constant 0.000000e+00 : bf16
    %27 = vector.broadcast %cst_23 : bf16 to vector<2x5x128xbf16>
    %c0_24 = arith.constant 0 : index
    %c0_25 = arith.constant 0 : index
    %c0_26 = arith.constant 0 : index
    %28 = vector.load %arg14[%c0_24, %c0_25, %c0_26] : memref<2x5x128xbf16, #tpu.memory_space<vmem>>, vector<2x5x128xbf16>
    tpu.vector_store %arg14[%c0_24, %c0_25, %c0_26], %27 {strides = array<i32>} : memref<2x5x128xbf16, #tpu.memory_space<vmem>>, vector<2x5x128xbf16>,
    %29 = arith.truncf %26 : vector<8x128xf32> to vector<8x128xbf16>
    %30 = vector.extract_strided_slice %29 {offsets = [0, 0], sizes = [1, 128], strides = [1, 1]} : vector<8x128xbf16> to vector<1x128xbf16>
    %c1_27 = arith.constant 1 : index
    %c0_28 = arith.constant 0 : index
    %c0_29 = arith.constant 0 : index
    %31 = vector.load %arg14[%c1_27, %c0_28, %c0_29] : memref<2x5x128xbf16, #tpu.memory_space<vmem>>, vector<1x1x128xbf16>
    %32 = vector.shape_cast %31 : vector<1x1x128xbf16> to vector<1x128xbf16>
    %33 = vector.shape_cast %30 : vector<1x128xbf16> to vector<1x1x128xbf16>
    tpu.vector_store %arg14[%c1_27, %c0_28, %c0_29], %33 {strides = array<i32>} : memref<2x5x128xbf16, #tpu.memory_space<vmem>>, vector<1x1x128xbf16>,
    %34 = vector.extract_strided_slice %29 {offsets = [1, 0], sizes = [1, 128], strides = [1, 1]} : vector<8x128xbf16> to vector<1x128xbf16>
    %c0_30 = arith.constant 0 : index
    %c1_31 = arith.constant 1 : index
    %c0_32 = arith.constant 0 : index
    %35 = vector.load %arg14[%c0_30, %c1_31, %c0_32] : memref<2x5x128xbf16, #tpu.memory_space<vmem>>, vector<1x1x128xbf16>
    %36 = vector.shape_cast %35 : vector<1x1x128xbf16> to vector<1x128xbf16>
    %37 = vector.shape_cast %34 : vector<1x128xbf16> to vector<1x1x128xbf16>
    tpu.vector_store %arg14[%c0_30, %c1_31, %c0_32], %37 {strides = array<i32>} : memref<2x5x128xbf16, #tpu.memory_space<vmem>>, vector<1x1x128xbf16>,
    %38 = vector.extract_strided_slice %29 {offsets = [2, 0], sizes = [1, 128], strides = [1, 1]} : vector<8x128xbf16> to vector<1x128xbf16>
    %c1_33 = arith.constant 1 : index
    %c1_34 = arith.constant 1 : index
    %c0_35 = arith.constant 0 : index
    %39 = vector.load %arg14[%c1_33, %c1_34, %c0_35] : memref<2x5x128xbf16, #tpu.memory_space<vmem>>, vector<1x1x128xbf16>
    %40 = vector.shape_cast %39 : vector<1x1x128xbf16> to vector<1x128xbf16>
    %41 = vector.shape_cast %38 : vector<1x128xbf16> to vector<1x1x128xbf16>
    tpu.vector_store %arg14[%c1_33, %c1_34, %c0_35], %41 {strides = array<i32>} : memref<2x5x128xbf16, #tpu.memory_space<vmem>>, vector<1x1x128xbf16>,
    %42 = vector.extract_strided_slice %29 {offsets = [3, 0], sizes = [1, 128], strides = [1, 1]} : vector<8x128xbf16> to vector<1x128xbf16>
    %c0_36 = arith.constant 0 : index
    %c2_37 = arith.constant 2 : index
    %c0_38 = arith.constant 0 : index
    %43 = vector.load %arg14[%c0_36, %c2_37, %c0_38] : memref<2x5x128xbf16, #tpu.memory_space<vmem>>, vector<1x1x128xbf16>
    %44 = vector.shape_cast %43 : vector<1x1x128xbf16> to vector<1x128xbf16>
    %45 = vector.shape_cast %42 : vector<1x128xbf16> to vector<1x1x128xbf16>
    tpu.vector_store %arg14[%c0_36, %c2_37, %c0_38], %45 {strides = array<i32>} : memref<2x5x128xbf16, #tpu.memory_space<vmem>>, vector<1x1x128xbf16>,
    %46 = vector.extract_strided_slice %29 {offsets = [4, 0], sizes = [1, 128], strides = [1, 1]} : vector<8x128xbf16> to vector<1x128xbf16>
    %c1_39 = arith.constant 1 : index
    %c2_40 = arith.constant 2 : index
    %c0_41 = arith.constant 0 : index
    %47 = vector.load %arg14[%c1_39, %c2_40, %c0_41] : memref<2x5x128xbf16, #tpu.memory_space<vmem>>, vector<1x1x128xbf16>
    %48 = vector.shape_cast %47 : vector<1x1x128xbf16> to vector<1x128xbf16>
    %49 = vector.shape_cast %46 : vector<1x128xbf16> to vector<1x1x128xbf16>
    tpu.vector_store %arg14[%c1_39, %c2_40, %c0_41], %49 {strides = array<i32>} : memref<2x5x128xbf16, #tpu.memory_space<vmem>>, vector<1x1x128xbf16>,
    %50 = vector.extract_strided_slice %29 {offsets = [5, 0], sizes = [1, 128], strides = [1, 1]} : vector<8x128xbf16> to vector<1x128xbf16>
    %c0_42 = arith.constant 0 : index
    %c3 = arith.constant 3 : index
    %c0_43 = arith.constant 0 : index
    %51 = vector.load %arg14[%c0_42, %c3, %c0_43] : memref<2x5x128xbf16, #tpu.memory_space<vmem>>, vector<1x1x128xbf16>
    %52 = vector.shape_cast %51 : vector<1x1x128xbf16> to vector<1x128xbf16>
    %53 = vector.shape_cast %50 : vector<1x128xbf16> to vector<1x1x128xbf16>
    tpu.vector_store %arg14[%c0_42, %c3, %c0_43], %53 {strides = array<i32>} : memref<2x5x128xbf16, #tpu.memory_space<vmem>>, vector<1x1x128xbf16>,
    %54 = vector.extract_strided_slice %29 {offsets = [6, 0], sizes = [1, 128], strides = [1, 1]} : vector<8x128xbf16> to vector<1x128xbf16>
    %c1_44 = arith.constant 1 : index
    %c3_45 = arith.constant 3 : index
    %c0_46 = arith.constant 0 : index
    %55 = vector.load %arg14[%c1_44, %c3_45, %c0_46] : memref<2x5x128xbf16, #tpu.memory_space<vmem>>, vector<1x1x128xbf16>
    %56 = vector.shape_cast %55 : vector<1x1x128xbf16> to vector<1x128xbf16>
    %57 = vector.shape_cast %54 : vector<1x128xbf16> to vector<1x1x128xbf16>
    tpu.vector_store %arg14[%c1_44, %c3_45, %c0_46], %57 {strides = array<i32>} : memref<2x5x128xbf16, #tpu.memory_space<vmem>>, vector<1x1x128xbf16>,
    %58 = vector.extract_strided_slice %29 {offsets = [7, 0], sizes = [1, 128], strides = [1, 1]} : vector<8x128xbf16> to vector<1x128xbf16>
    %c0_47 = arith.constant 0 : index
    %c4 = arith.constant 4 : index
    %c0_48 = arith.constant 0 : index
    %59 = vector.load %arg14[%c0_47, %c4, %c0_48] : memref<2x5x128xbf16, #tpu.memory_space<vmem>>, vector<1x1x128xbf16>
    %60 = vector.shape_cast %59 : vector<1x1x128xbf16> to vector<1x128xbf16>
    %61 = vector.shape_cast %58 : vector<1x128xbf16> to vector<1x1x128xbf16>
    tpu.vector_store %arg14[%c0_47, %c4, %c0_48], %61 {strides = array<i32>} : memref<2x5x128xbf16, #tpu.memory_space<vmem>>, vector<1x1x128xbf16>,
    %cst_49 = arith.constant 0.000000e+00 : f32
    %62 = vector.broadcast %cst_49 : f32 to vector<4x128xf32>
    %c0_50 = arith.constant 0 : index
    %c0_51 = arith.constant 0 : index
    %c0_52 = arith.constant 0 : index
    %63 = vector.load %arg14[%c0_50, %c0_51, %c0_52] : memref<2x5x128xbf16, #tpu.memory_space<vmem>>, vector<1x4x128xbf16>
    %64 = vector.shape_cast %63 : vector<1x4x128xbf16> to vector<4x128xbf16>
    %c0_53 = arith.constant 0 : index
    %c0_54 = arith.constant 0 : index
    %c0_55 = arith.constant 0 : index
    %65 = vector.load %arg4[%c0_53, %c0_54, %c0_55] : memref<3x128x128xbf16, #tpu.memory_space<vmem>>, vector<1x128x128xbf16>
    %66 = vector.shape_cast %65 : vector<1x128x128xbf16> to vector<128x128xbf16>
    %cst_56 = arith.constant dense<0.000000e+00> : vector<4x128xf32>
    %67 = tpu.matmul %64, %66, %cst_56 {dimension_numbers = #tpu.dot_dimension_numbers<[1], [0], [0], [1], [0, 0, 1, 1], [], []>} : vector<4x128xbf16>, vector<128x128xbf16>, vector<4x128xf32> -> vector<4x128xf32>
    %68 = arith.addf %62, %67 : vector<4x128xf32>
    %c1_57 = arith.constant 1 : index
    %c0_58 = arith.constant 0 : index
    %c0_59 = arith.constant 0 : index
    %69 = vector.load %arg14[%c1_57, %c0_58, %c0_59] : memref<2x5x128xbf16, #tpu.memory_space<vmem>>, vector<1x4x128xbf16>
    %70 = vector.shape_cast %69 : vector<1x4x128xbf16> to vector<4x128xbf16>
    %c1_60 = arith.constant 1 : index
    %c0_61 = arith.constant 0 : index
    %c0_62 = arith.constant 0 : index
    %71 = vector.load %arg4[%c1_60, %c0_61, %c0_62] : memref<3x128x128xbf16, #tpu.memory_space<vmem>>, vector<1x128x128xbf16>
    %72 = vector.shape_cast %71 : vector<1x128x128xbf16> to vector<128x128xbf16>
    %cst_63 = arith.constant dense<0.000000e+00> : vector<4x128xf32>
    %73 = tpu.matmul %70, %72, %cst_63 {dimension_numbers = #tpu.dot_dimension_numbers<[1], [0], [0], [1], [0, 0, 1, 1], [], []>} : vector<4x128xbf16>, vector<128x128xbf16>, vector<4x128xf32> -> vector<4x128xf32>
    %74 = arith.addf %68, %73 : vector<4x128xf32>
    %c0_64 = arith.constant 0 : index
    %c1_65 = arith.constant 1 : index
    %c0_66 = arith.constant 0 : index
    %75 = vector.load %arg14[%c0_64, %c1_65, %c0_66] : memref<2x5x128xbf16, #tpu.memory_space<vmem>>, vector<1x4x128xbf16>
    %76 = vector.shape_cast %75 : vector<1x4x128xbf16> to vector<4x128xbf16>
    %c2_67 = arith.constant 2 : index
    %c0_68 = arith.constant 0 : index
    %c0_69 = arith.constant 0 : index
    %77 = vector.load %arg4[%c2_67, %c0_68, %c0_69] : memref<3x128x128xbf16, #tpu.memory_space<vmem>>, vector<1x128x128xbf16>
    %78 = vector.shape_cast %77 : vector<1x128x128xbf16> to vector<128x128xbf16>
    %cst_70 = arith.constant dense<0.000000e+00> : vector<4x128xf32>
    %79 = tpu.matmul %76, %78, %cst_70 {dimension_numbers = #tpu.dot_dimension_numbers<[1], [0], [0], [1], [0, 0, 1, 1], [], []>} : vector<4x128xbf16>, vector<128x128xbf16>, vector<4x128xf32> -> vector<4x128xf32>
    %80 = arith.addf %74, %79 : vector<4x128xf32>
    %c0_71 = arith.constant 0 : index
    %c0_72 = arith.constant 0 : index
    %81 = vector.load %arg5[%c0_71, %c0_72] : memref<1x128xf32, #tpu.memory_space<vmem>>, vector<1x128xf32>
    %82 = vector.broadcast %81 : vector<1x128xf32> to vector<4x128xf32>
    %83 = arith.mulf %80, %82 : vector<4x128xf32>
    %c0_73 = arith.constant 0 : index
    %c0_74 = arith.constant 0 : index
    %84 = vector.load %arg6[%c0_73, %c0_74] : memref<1x128xf32, #tpu.memory_space<vmem>>, vector<1x128xf32>
    %85 = vector.broadcast %84 : vector<1x128xf32> to vector<4x128xf32>
    %86 = arith.addf %83, %85 : vector<4x128xf32>
    %cst_75 = arith.constant 0.000000e+00 : f32
    %87 = vector.broadcast %cst_75 : f32 to vector<4x128xf32>
    %88 = arith.maximumf %86, %87 : vector<4x128xf32>
    %cst_76 = arith.constant 0.000000e+00 : bf16
    %89 = vector.broadcast %cst_76 : bf16 to vector<2x3x128xbf16>
    %c0_77 = arith.constant 0 : index
    %c0_78 = arith.constant 0 : index
    %c0_79 = arith.constant 0 : index
    %90 = vector.load %arg15[%c0_77, %c0_78, %c0_79] : memref<2x3x128xbf16, #tpu.memory_space<vmem>>, vector<2x3x128xbf16>
    tpu.vector_store %arg15[%c0_77, %c0_78, %c0_79], %89 {strides = array<i32>} : memref<2x3x128xbf16, #tpu.memory_space<vmem>>, vector<2x3x128xbf16>,
    %91 = arith.truncf %88 : vector<4x128xf32> to vector<4x128xbf16>
    %92 = vector.extract_strided_slice %91 {offsets = [0, 0], sizes = [1, 128], strides = [1, 1]} : vector<4x128xbf16> to vector<1x128xbf16>
    %c1_80 = arith.constant 1 : index
    %c0_81 = arith.constant 0 : index
    %c0_82 = arith.constant 0 : index
    %93 = vector.load %arg15[%c1_80, %c0_81, %c0_82] : memref<2x3x128xbf16, #tpu.memory_space<vmem>>, vector<1x1x128xbf16>
    %94 = vector.shape_cast %93 : vector<1x1x128xbf16> to vector<1x128xbf16>
    %95 = vector.shape_cast %92 : vector<1x128xbf16> to vector<1x1x128xbf16>
    tpu.vector_store %arg15[%c1_80, %c0_81, %c0_82], %95 {strides = array<i32>} : memref<2x3x128xbf16, #tpu.memory_space<vmem>>, vector<1x1x128xbf16>,
    %96 = vector.extract_strided_slice %91 {offsets = [1, 0], sizes = [1, 128], strides = [1, 1]} : vector<4x128xbf16> to vector<1x128xbf16>
    %c0_83 = arith.constant 0 : index
    %c1_84 = arith.constant 1 : index
    %c0_85 = arith.constant 0 : index
    %97 = vector.load %arg15[%c0_83, %c1_84, %c0_85] : memref<2x3x128xbf16, #tpu.memory_space<vmem>>, vector<1x1x128xbf16>
    %98 = vector.shape_cast %97 : vector<1x1x128xbf16> to vector<1x128xbf16>
    %99 = vector.shape_cast %96 : vector<1x128xbf16> to vector<1x1x128xbf16>
    tpu.vector_store %arg15[%c0_83, %c1_84, %c0_85], %99 {strides = array<i32>} : memref<2x3x128xbf16, #tpu.memory_space<vmem>>, vector<1x1x128xbf16>,
    %100 = vector.extract_strided_slice %91 {offsets = [2, 0], sizes = [1, 128], strides = [1, 1]} : vector<4x128xbf16> to vector<1x128xbf16>
    %c1_86 = arith.constant 1 : index
    %c1_87 = arith.constant 1 : index
    %c0_88 = arith.constant 0 : index
    %101 = vector.load %arg15[%c1_86, %c1_87, %c0_88] : memref<2x3x128xbf16, #tpu.memory_space<vmem>>, vector<1x1x128xbf16>
    %102 = vector.shape_cast %101 : vector<1x1x128xbf16> to vector<1x128xbf16>
    %103 = vector.shape_cast %100 : vector<1x128xbf16> to vector<1x1x128xbf16>
    tpu.vector_store %arg15[%c1_86, %c1_87, %c0_88], %103 {strides = array<i32>} : memref<2x3x128xbf16, #tpu.memory_space<vmem>>, vector<1x1x128xbf16>,
    %104 = vector.extract_strided_slice %91 {offsets = [3, 0], sizes = [1, 128], strides = [1, 1]} : vector<4x128xbf16> to vector<1x128xbf16>
    %c0_89 = arith.constant 0 : index
    %c2_90 = arith.constant 2 : index
    %c0_91 = arith.constant 0 : index
    %105 = vector.load %arg15[%c0_89, %c2_90, %c0_91] : memref<2x3x128xbf16, #tpu.memory_space<vmem>>, vector<1x1x128xbf16>
    %106 = vector.shape_cast %105 : vector<1x1x128xbf16> to vector<1x128xbf16>
    %107 = vector.shape_cast %104 : vector<1x128xbf16> to vector<1x1x128xbf16>
    tpu.vector_store %arg15[%c0_89, %c2_90, %c0_91], %107 {strides = array<i32>} : memref<2x3x128xbf16, #tpu.memory_space<vmem>>, vector<1x1x128xbf16>,
    %cst_92 = arith.constant 0.000000e+00 : f32
    %108 = vector.broadcast %cst_92 : f32 to vector<2x128xf32>
    %c0_93 = arith.constant 0 : index
    %c0_94 = arith.constant 0 : index
    %c0_95 = arith.constant 0 : index
    %109 = vector.load %arg15[%c0_93, %c0_94, %c0_95] : memref<2x3x128xbf16, #tpu.memory_space<vmem>>, vector<1x2x128xbf16>
    %110 = vector.shape_cast %109 : vector<1x2x128xbf16> to vector<2x128xbf16>
    %c0_96 = arith.constant 0 : index
    %c0_97 = arith.constant 0 : index
    %c0_98 = arith.constant 0 : index
    %111 = vector.load %arg7[%c0_96, %c0_97, %c0_98] : memref<3x128x128xbf16, #tpu.memory_space<vmem>>, vector<1x128x128xbf16>
    %112 = vector.shape_cast %111 : vector<1x128x128xbf16> to vector<128x128xbf16>
    %cst_99 = arith.constant dense<0.000000e+00> : vector<2x128xf32>
    %113 = tpu.matmul %110, %112, %cst_99 {dimension_numbers = #tpu.dot_dimension_numbers<[1], [0], [0], [1], [0, 0, 1, 1], [], []>} : vector<2x128xbf16>, vector<128x128xbf16>, vector<2x128xf32> -> vector<2x128xf32>
    %114 = arith.addf %108, %113 : vector<2x128xf32>
    %c1_100 = arith.constant 1 : index
    %c0_101 = arith.constant 0 : index
    %c0_102 = arith.constant 0 : index
    %115 = vector.load %arg15[%c1_100, %c0_101, %c0_102] : memref<2x3x128xbf16, #tpu.memory_space<vmem>>, vector<1x2x128xbf16>
    %116 = vector.shape_cast %115 : vector<1x2x128xbf16> to vector<2x128xbf16>
    %c1_103 = arith.constant 1 : index
    %c0_104 = arith.constant 0 : index
    %c0_105 = arith.constant 0 : index
    %117 = vector.load %arg7[%c1_103, %c0_104, %c0_105] : memref<3x128x128xbf16, #tpu.memory_space<vmem>>, vector<1x128x128xbf16>
    %118 = vector.shape_cast %117 : vector<1x128x128xbf16> to vector<128x128xbf16>
    %cst_106 = arith.constant dense<0.000000e+00> : vector<2x128xf32>
    %119 = tpu.matmul %116, %118, %cst_106 {dimension_numbers = #tpu.dot_dimension_numbers<[1], [0], [0], [1], [0, 0, 1, 1], [], []>} : vector<2x128xbf16>, vector<128x128xbf16>, vector<2x128xf32> -> vector<2x128xf32>
    %120 = arith.addf %114, %119 : vector<2x128xf32>
    %c0_107 = arith.constant 0 : index
    %c1_108 = arith.constant 1 : index
    %c0_109 = arith.constant 0 : index
    %121 = vector.load %arg15[%c0_107, %c1_108, %c0_109] : memref<2x3x128xbf16, #tpu.memory_space<vmem>>, vector<1x2x128xbf16>
    %122 = vector.shape_cast %121 : vector<1x2x128xbf16> to vector<2x128xbf16>
    %c2_110 = arith.constant 2 : index
    %c0_111 = arith.constant 0 : index
    %c0_112 = arith.constant 0 : index
    %123 = vector.load %arg7[%c2_110, %c0_111, %c0_112] : memref<3x128x128xbf16, #tpu.memory_space<vmem>>, vector<1x128x128xbf16>
    %124 = vector.shape_cast %123 : vector<1x128x128xbf16> to vector<128x128xbf16>
    %cst_113 = arith.constant dense<0.000000e+00> : vector<2x128xf32>
    %125 = tpu.matmul %122, %124, %cst_113 {dimension_numbers = #tpu.dot_dimension_numbers<[1], [0], [0], [1], [0, 0, 1, 1], [], []>} : vector<2x128xbf16>, vector<128x128xbf16>, vector<2x128xf32> -> vector<2x128xf32>
    %126 = arith.addf %120, %125 : vector<2x128xf32>
    %c0_114 = arith.constant 0 : index
    %c0_115 = arith.constant 0 : index
    %127 = vector.load %arg8[%c0_114, %c0_115] : memref<1x128xf32, #tpu.memory_space<vmem>>, vector<1x128xf32>
    %128 = vector.broadcast %127 : vector<1x128xf32> to vector<2x128xf32>
    %129 = arith.mulf %126, %128 : vector<2x128xf32>
    %c0_116 = arith.constant 0 : index
    %c0_117 = arith.constant 0 : index
    %130 = vector.load %arg9[%c0_116, %c0_117] : memref<1x128xf32, #tpu.memory_space<vmem>>, vector<1x128xf32>
    %131 = vector.broadcast %130 : vector<1x128xf32> to vector<2x128xf32>
    %132 = arith.addf %129, %131 : vector<2x128xf32>
    %cst_118 = arith.constant 0.000000e+00 : f32
    %133 = vector.broadcast %cst_118 : f32 to vector<2x128xf32>
    %134 = arith.maximumf %132, %133 : vector<2x128xf32>
    %cst_119 = arith.constant 0.000000e+00 : bf16
    %135 = vector.broadcast %cst_119 : bf16 to vector<2x2x128xbf16>
    %c0_120 = arith.constant 0 : index
    %c0_121 = arith.constant 0 : index
    %c0_122 = arith.constant 0 : index
    %136 = vector.load %arg16[%c0_120, %c0_121, %c0_122] : memref<2x2x128xbf16, #tpu.memory_space<vmem>>, vector<2x2x128xbf16>
    tpu.vector_store %arg16[%c0_120, %c0_121, %c0_122], %135 {strides = array<i32>} : memref<2x2x128xbf16, #tpu.memory_space<vmem>>, vector<2x2x128xbf16>,
    %137 = arith.truncf %134 : vector<2x128xf32> to vector<2x128xbf16>
    %138 = vector.extract_strided_slice %137 {offsets = [0, 0], sizes = [1, 128], strides = [1, 1]} : vector<2x128xbf16> to vector<1x128xbf16>
    %c1_123 = arith.constant 1 : index
    %c0_124 = arith.constant 0 : index
    %c0_125 = arith.constant 0 : index
    %139 = vector.load %arg16[%c1_123, %c0_124, %c0_125] : memref<2x2x128xbf16, #tpu.memory_space<vmem>>, vector<1x1x128xbf16>
    %140 = vector.shape_cast %139 : vector<1x1x128xbf16> to vector<1x128xbf16>
    %141 = vector.shape_cast %138 : vector<1x128xbf16> to vector<1x1x128xbf16>
    tpu.vector_store %arg16[%c1_123, %c0_124, %c0_125], %141 {strides = array<i32>} : memref<2x2x128xbf16, #tpu.memory_space<vmem>>, vector<1x1x128xbf16>,
    %142 = vector.extract_strided_slice %137 {offsets = [1, 0], sizes = [1, 128], strides = [1, 1]} : vector<2x128xbf16> to vector<1x128xbf16>
    %c0_126 = arith.constant 0 : index
    %c1_127 = arith.constant 1 : index
    %c0_128 = arith.constant 0 : index
    %143 = vector.load %arg16[%c0_126, %c1_127, %c0_128] : memref<2x2x128xbf16, #tpu.memory_space<vmem>>, vector<1x1x128xbf16>
    %144 = vector.shape_cast %143 : vector<1x1x128xbf16> to vector<1x128xbf16>
    %145 = vector.shape_cast %142 : vector<1x128xbf16> to vector<1x1x128xbf16>
    tpu.vector_store %arg16[%c0_126, %c1_127, %c0_128], %145 {strides = array<i32>} : memref<2x2x128xbf16, #tpu.memory_space<vmem>>, vector<1x1x128xbf16>,
    %cst_129 = arith.constant 0.000000e+00 : f32
    %146 = vector.broadcast %cst_129 : f32 to vector<1x128xf32>
    %c0_130 = arith.constant 0 : index
    %c0_131 = arith.constant 0 : index
    %c0_132 = arith.constant 0 : index
    %147 = vector.load %arg16[%c0_130, %c0_131, %c0_132] : memref<2x2x128xbf16, #tpu.memory_space<vmem>>, vector<1x1x128xbf16>
    %148 = vector.shape_cast %147 : vector<1x1x128xbf16> to vector<1x128xbf16>
    %c0_133 = arith.constant 0 : index
    %c0_134 = arith.constant 0 : index
    %c0_135 = arith.constant 0 : index
    %149 = vector.load %arg10[%c0_133, %c0_134, %c0_135] : memref<3x128x128xbf16, #tpu.memory_space<vmem>>, vector<1x128x128xbf16>
    %150 = vector.shape_cast %149 : vector<1x128x128xbf16> to vector<128x128xbf16>
    %cst_136 = arith.constant dense<0.000000e+00> : vector<1x128xf32>
    %151 = tpu.matmul %148, %150, %cst_136 {dimension_numbers = #tpu.dot_dimension_numbers<[1], [0], [0], [1], [0, 0, 1, 1], [], []>} : vector<1x128xbf16>, vector<128x128xbf16>, vector<1x128xf32> -> vector<1x128xf32>
    %152 = arith.addf %146, %151 : vector<1x128xf32>
    %c1_137 = arith.constant 1 : index
    %c0_138 = arith.constant 0 : index
    %c0_139 = arith.constant 0 : index
    %153 = vector.load %arg16[%c1_137, %c0_138, %c0_139] : memref<2x2x128xbf16, #tpu.memory_space<vmem>>, vector<1x1x128xbf16>
    %154 = vector.shape_cast %153 : vector<1x1x128xbf16> to vector<1x128xbf16>
    %c1_140 = arith.constant 1 : index
    %c0_141 = arith.constant 0 : index
    %c0_142 = arith.constant 0 : index
    %155 = vector.load %arg10[%c1_140, %c0_141, %c0_142] : memref<3x128x128xbf16, #tpu.memory_space<vmem>>, vector<1x128x128xbf16>
    %156 = vector.shape_cast %155 : vector<1x128x128xbf16> to vector<128x128xbf16>
    %cst_143 = arith.constant dense<0.000000e+00> : vector<1x128xf32>
    %157 = tpu.matmul %154, %156, %cst_143 {dimension_numbers = #tpu.dot_dimension_numbers<[1], [0], [0], [1], [0, 0, 1, 1], [], []>} : vector<1x128xbf16>, vector<128x128xbf16>, vector<1x128xf32> -> vector<1x128xf32>
    %158 = arith.addf %152, %157 : vector<1x128xf32>
    %c0_144 = arith.constant 0 : index
    %c1_145 = arith.constant 1 : index
    %c0_146 = arith.constant 0 : index
    %159 = vector.load %arg16[%c0_144, %c1_145, %c0_146] : memref<2x2x128xbf16, #tpu.memory_space<vmem>>, vector<1x1x128xbf16>
    %160 = vector.shape_cast %159 : vector<1x1x128xbf16> to vector<1x128xbf16>
    %c2_147 = arith.constant 2 : index
    %c0_148 = arith.constant 0 : index
    %c0_149 = arith.constant 0 : index
    %161 = vector.load %arg10[%c2_147, %c0_148, %c0_149] : memref<3x128x128xbf16, #tpu.memory_space<vmem>>, vector<1x128x128xbf16>
    %162 = vector.shape_cast %161 : vector<1x128x128xbf16> to vector<128x128xbf16>
    %cst_150 = arith.constant dense<0.000000e+00> : vector<1x128xf32>
    %163 = tpu.matmul %160, %162, %cst_150 {dimension_numbers = #tpu.dot_dimension_numbers<[1], [0], [0], [1], [0, 0, 1, 1], [], []>} : vector<1x128xbf16>, vector<128x128xbf16>, vector<1x128xf32> -> vector<1x128xf32>
    %164 = arith.addf %158, %163 : vector<1x128xf32>
    %c0_151 = arith.constant 0 : index
    %c0_152 = arith.constant 0 : index
    %165 = vector.load %arg11[%c0_151, %c0_152] : memref<1x128xf32, #tpu.memory_space<vmem>>, vector<1x128xf32>
    %166 = arith.mulf %164, %165 : vector<1x128xf32>
    %c0_153 = arith.constant 0 : index
    %c0_154 = arith.constant 0 : index
    %167 = vector.load %arg12[%c0_153, %c0_154] : memref<1x128xf32, #tpu.memory_space<vmem>>, vector<1x128xf32>
    %168 = arith.addf %166, %167 : vector<1x128xf32>
    %cst_155 = arith.constant 0.000000e+00 : f32
    %169 = vector.broadcast %cst_155 : f32 to vector<1x128xf32>
    %170 = arith.maximumf %168, %169 : vector<1x128xf32>
    %171 = arith.truncf %170 : vector<1x128xf32> to vector<1x128xbf16>
    %c0_156 = arith.constant 0 : index
    %c0_157 = arith.constant 0 : index
    %172 = vector.load %arg13[%c0_156, %c0_157] : memref<1x128xbf16, #tpu.memory_space<vmem>>, vector<1x128xbf16>
    tpu.vector_store %arg13[%c0_156, %c0_157], %171 {strides = array<i32>} : memref<1x128xbf16, #tpu.memory_space<vmem>>, vector<1x128xbf16>,
    return
  }
}

</mosaic_0001>

<bundles_post_ra>
// kernel: tpu_custom_call.1
= control target key start
LH: loop header
LB: loop body
LE: loop exit
PB: predicated region body
PF: predicated region fallthrough
CT: control target
= control target key end

     0   :  { %18 = vsyncpa [#allocation6], 0  ;;  %s2550_s0 = inlined_call_operand.vmem [shape: bf16[2,9,96], index: 0, kind: input, shape index: {}]   ;;  %s2551_s1 = inlined_call_operand.hbm [shape: bf16[3,96,128], index: 1, kind: input, shape index: {}]   ;;  %s2552_s2 = inlined_call_operand.vmem [shape: f32[1,128], index: 2, kind: input, shape index: {}]   ;;  %s2553_s3 = inlined_call_operand.vmem [shape: f32[1,128], index: 3, kind: input, shape index: {}]   ;;  %s2554_s4 = inlined_call_operand.hbm [shape: bf16[3,128,128], index: 4, kind: input, shape index: {}]   ;;  %s2555_s5 = inlined_call_operand.vmem [shape: f32[1,128], index: 5, kind: input, shape index: {}]   ;;  %s2556_s6 = inlined_call_operand.vmem [shape: f32[1,128], index: 6, kind: input, shape index: {}]   ;;  %s2557_s7 = inlined_call_operand.hbm [shape: bf16[3,128,128], index: 7, kind: input, shape index: {}]   ;;  %s2558_s8 = inlined_call_operand.vmem [shape: f32[1,128], index: 8, kind: input, shape index: {}]   ;;  %s2559_s9 = inlined_call_operand.vmem [shape: f32[1,128], index: 9, kind: input, shape index: {}]   ;;  %s2560_s10 = inlined_call_operand.hbm [shape: bf16[3,128,128], index: 10, kind: input, shape index: {}]   ;;  %s2561_s11 = inlined_call_operand.vmem [shape: f32[1,128], index: 11, kind: input, shape index: {}]   ;;  %s2562_s12 = inlined_call_operand.vmem [shape: f32[1,128], index: 12, kind: input, shape index: {}]   ;;  %s2563_s13 = inlined_call_operand.hbm [shape: bf16[1,128], index: 13, kind: output, shape index: {}]  }
   0x1   :  { %19 = vsyncpa [#allocation9], 0 }
   0x2   :  { %20 = vsyncpa [#allocation12], 0 }
   0x3   :  { %21 = vsyncpa [#allocation7], 0  ;;  %s2245_s25 = smov [#allocation8]   ;;  %s2246_s27 = smov [#allocation5]  }
   0x4   :  { %s45_s26 = sshll.u32 %s2245_s25, 4  ;;  %s29_s28 = sshll.u32 %s2246_s27, 4  ;;  %s46_s26 = int_to_ptr.vmem [resolvable:$true] %s45_s26  ;;  %s30_s28 = int_to_ptr.vmem [resolvable:$true] %s29_s28 }
   0x5   :  { %s2145_s29 = scalar_lea.vmem %s46_s26, 3072  ;;  %p2150_p1 = scmp.lt.s32.totalorder %s46_s26, %s46_s26 }
   0x6   :  { %p2146_p0 = scmp.ne.s32.totalorder %s46_s26, %s2145_s29  ;;  %p2151_p2 = scmp.lt.s32.totalorder %s2145_s29, %s2145_s29 }
   0x8   :  { %p2152_p3 = por %p2151_p2, %p2150_p1 }
   0xa   :  { %p2153_p4 = pnand %p2152_p3, %p2146_p0 }
   0xc   :  { %2156 = shalt.err (!%p2153_p4)
}
   0xd   :  { %s2247_s30 = smov 64   ;;  %s2248_s14 = smov 4  }
   0xe   :  { %51 = dma.hbm_to_vmem [thread:$0]  %s2554_s4, 3072, %s46_s26, [#allocation9], %s2247_s30, %s2247_s30, %s2248_s14  }
   0xf   :  { %s2165_s17 = scalar_lea.vmem %s30_s28, 2304  ;;  %p2170_p6 = scmp.lt.s32.totalorder %s30_s28, %s30_s28 }
  0x10   :  { %p2166_p5 = scmp.ne.s32.totalorder %s30_s28, %s2165_s17  ;;  %p2171_p7 = scmp.lt.s32.totalorder %s2165_s17, %s2165_s17 }
  0x12   :  { %p2172_p8 = por %p2171_p7, %p2170_p6 }
  0x14   :  { %p2173_p9 = pnand %p2172_p8, %p2166_p5 }
  0x16   :  { %2176 = shalt.err (!%p2173_p9)
}
  0x17   :  { %35 = dma.hbm_to_vmem [thread:$0]  %s2551_s1, 2304, %s30_s28, [#allocation6], %s2247_s30, %s2247_s30, %s2248_s14  }
  0x18   :  { %s2249_s20 = smov [#allocation10]   ;;  %s2250_s22 = smov [#allocation11]  }
  0x19   :  { %s61_s21 = sshll.u32 %s2249_s20, 4  ;;  %s77_s23 = sshll.u32 %s2250_s22, 4  ;;  %s62_s21 = int_to_ptr.vmem [resolvable:$true] %s61_s21  ;;  %s78_s23 = int_to_ptr.vmem [resolvable:$true] %s77_s23 }
  0x1a   :  { %s2185_s4 = scalar_lea.vmem %s62_s21, 3072  ;;  %p2190_p11 = scmp.lt.s32.totalorder %s62_s21, %s62_s21 }
  0x1b   :  { %p2186_p10 = scmp.ne.s32.totalorder %s62_s21, %s2185_s4  ;;  %p2191_p12 = scmp.lt.s32.totalorder %s2185_s4, %s2185_s4 }
  0x1d   :  { %p2192_p13 = por %p2191_p12, %p2190_p11 }
  0x1f   :  { %p2193_p0 = pnand %p2192_p13, %p2186_p10 }
  0x21   :  { %2196 = shalt.err (!%p2193_p0)
}
  0x22   :  { %67 = dma.hbm_to_vmem [thread:$0]  %s2557_s7, 3072, %s62_s21, [#allocation9], %s2247_s30, %s2247_s30, %s2248_s14  }
  0x23   :  { %s2205_s1 = scalar_lea.vmem %s78_s23, 3072  ;;  %p2210_p2 = scmp.lt.s32.totalorder %s78_s23, %s78_s23 }
  0x24   :  { %p2206_p1 = scmp.ne.s32.totalorder %s78_s23, %s2205_s1  ;;  %p2211_p3 = scmp.lt.s32.totalorder %s2205_s1, %s2205_s1 }
  0x26   :  { %p2212_p4 = por %p2211_p3, %p2210_p2 }
  0x28   :  { %p2213_p5 = pnand %p2212_p4, %p2206_p1 }
  0x2a   :  { %2216 = shalt.err (!%p2213_p5)
}
  0x2b   :  { %83 = dma.hbm_to_vmem [thread:$0]  %s2560_s10, 3072, %s78_s23, [#allocation12], %s2247_s30, %s2247_s30, %s2248_s14  }
  0x2c   :  { %2237 = dma.done.wait [#allocation6], 2304  }
  0x2d   :  { %2238 = vsyncadd [#allocation6], 4294964992 }
  0x2e   :  { %2239 = dma.done.wait [#allocation9], 6144  }
  0x2f   :  { %2240 = vsyncadd [#allocation9], 4294961152 }
  0x30   :  { %2241 = dma.done.wait [#allocation12], 3072  }
  0x31   :  { %2242 = vsyncadd [#allocation12], 4294964224  ;;  %v2251_v0 = vmov 0.0   ;;  %vm2252_vm0 = vmmov 0   ;;  %v2045_v1 = vld [vmem:[#allocation5 + $0x58] sm:$0xff]   ;;  %v2046_v2 = vld [vmem:[#allocation5 + $0x28] sm:$0xff]  }
  0x32   :  { %1805 = vmatprep.subr.bf16.mxu0 %v2251_v0  ;;  %1821 = vmatprep.subr.bf16.mxu1 %v2251_v0  ;;  %v2047_v3 = vld [vmem:[#allocation5 + $0x50] sm:$0xff]   ;;  %v2048_v4 = vld [vmem:[#allocation5 + $0x20] sm:$0xff]   ;;  %v2049_v5 = vld [vmem:[#allocation5 + $0x48] sm:$0xff]   ;;  %vm165_vm1 = vcmask 785408   ;;  %vm412_vm2 = vcmask 1042432   ;;  %vm423_vm5 = vcmask 1040384  }
  0x33   :  { %1817 = vmatprep.mubr.msk.bf16.mxu0 %vm2252_vm0, %v2251_v0  ;;  %1833 = vmatprep.mubr.msk.bf16.mxu1 %vm2252_vm0, %v2251_v0  ;;  %v2050_v6 = vld [vmem:[#allocation5 + $0x18] sm:$0xff]   ;;  %v2051_v7 = vld [vmem:[#allocation5 + $0x40] sm:$0xff]   ;;  %v2052_v8 = vld [vmem:[#allocation5 + $0x10] sm:$0xff]   ;;  %vm413_vm3 = vsmask.f32 2304  ;;  %vm451_vm9 = vcmask 1041409  }
  0x34   :  { %1806 = vmatpush3.bf16.msra.mxu0 %v2045_v1  ;;  %1822 = vmatpush3.bf16.msra.mxu1 %v2046_v2  ;;  %v2053_v9 = vld [vmem:[#allocation5 + $0x38] sm:$0xff]   ;;  %v2054_v10 = vld [vmem:[#allocation5 + $0x8] sm:$0xff]   ;;  %v2055_v11 = vld [vmem:[#allocation5 + $0x30] sm:$0xff]   ;;  %vm424_vm6 = vsmask.f32 256  ;;  %vm477_vm12 = vcmask 1042434  }
  0x35   :  { %1807 = vmatprep.subr.bf16.mxu0 %v2251_v0  ;;  %1823 = vmatprep.subr.bf16.mxu1 %v2251_v0  ;;  %v2056_v12 = vld [vmem:[#allocation5] sm:$0xff]   ;;  %v2063_v13 = vld [vmem:[%s2550_s0] sm:$0x1f]   ;;  %v1592_v14 = vld [vmem:[%s2550_s0 + $0x8] sm:$0xf]  ;;  %s2256_s4 = smov [#allocation13]  }
  0x36   :  { %v101_v15 = vld [vmem:[%s2550_s0] sm:$0xf]  ;;  %v2057_v16 = vld [vmem:[#allocation5 + $0x88] sm:$0xff]   ;;  %v311_v17 = vshll.u32 %v2063_v13, 16  ;;  %v309_v18 = vshrl.u32 %v2063_v13, 16  ;;  %v2058_v20 = vld [vmem:[#allocation5 + $0x80] sm:$0xff]  }
  0x37   :  { %v2059_v21 = vld [vmem:[#allocation5 + $0x78] sm:$0xff]   ;;  %v2060_v22 = vld [vmem:[#allocation5 + $0x70] sm:$0xff]   ;;  %v2061_v23 = vld [vmem:[#allocation5 + $0x68] sm:$0xff]   ;;  %vm429_vm7 = vsmask.f32 7938  ;;  %s1581_s24 = sshll.u32 %s2256_s4, 4  ;;  %s1582_s24 = int_to_ptr.vmem [resolvable:$true] %s1581_s24 }
  0x38   :  { %1808 = vmatpush3.bf16.msra.mxu0 %v2047_v3  ;;  %1824 = vmatpush3.bf16.msra.mxu1 %v2048_v4  ;;  %v313_v19 = vrot.slane %v311_v17, 1  ;;  %v2062_v24 = vld [vmem:[#allocation5 + $0x60] sm:$0xff]   ;;  %v2064_v26 = vld [vmem:[#allocation8 + $0x38] sm:$0xff]   ;;  %vm414_vm4 = vmand %vm412_vm2, %vm413_vm3  ;;  %vm452_vm10 = vsmask.f32 1280  ;;  %vm828_vm2 = vcmask 1041408   ;;  %p2222_p7 = scmp.lt.s32.totalorder %s1582_s24, %s1582_s24 }
  0x39   :  { %1809 = vmatprep.subr.bf16.mxu0 %v2251_v0  ;;  %1825 = vmatprep.subr.bf16.mxu1 %v2251_v0  ;;  %v2065_v27 = vld [vmem:[#allocation8 + $0x78] sm:$0xff]   ;;  %v415_v28 = vld [vmem:[#allocation2] sm:$0x7]  ;;  %v418_v30 = vld [vmem:[#allocation2 + $0x4] sm:$0x7]  ;;  %s2221_s25 = scalar_lea.vmem %s1582_s24, 32 }
  0x3a   :  { %v314_v25 = vor.u32 %v313_v19, %v309_v18  ;;  %v416_v29 = vsel %vm414_vm4, 0, %v415_v28  ;;  %v419_v31 = vsel %vm414_vm4, 0, %v418_v30  ;;  %v2066_v32 = vld [vmem:[#allocation8 + $0x30] sm:$0xff]   ;;  %v2068_v34 = vld [vmem:[#allocation8 + $0x28] sm:$0xff]   ;;  %v2070_v36 = vld [vmem:[#allocation8 + $0x20] sm:$0xff]  }
  0x3b   :  { %417 = vst [vmem:[#allocation2] sm:$0x7] %v416_v29  ;;  %420 = vst [vmem:[#allocation2 + $0x4] sm:$0x7] %v419_v31  ;;  %v2067_v33 = vld [vmem:[#allocation8 + $0x70] sm:$0xff]   ;;  %v2069_v35 = vld [vmem:[#allocation8 + $0x68] sm:$0xff]  }
  0x3c   :  { %1810 = vmatpush3.bf16.msra.mxu0 %v2049_v5  ;;  %1826 = vmatpush3.bf16.msra.mxu1 %v2050_v6  ;;  %v2071_v37 = vld [vmem:[#allocation8 + $0x60] sm:$0xff]   ;;  %v2072_v38 = vld [vmem:[#allocation8 + $0x18] sm:$0xff]   ;;  %v2074_v40 = vld [vmem:[#allocation8 + $0x10] sm:$0xff]   ;;  %vm463_vm15 = vsmask.f32 7942 }
  0x3d   :  { %1811 = vmatprep.subr.bf16.mxu0 %v2251_v0  ;;  %1827 = vmatprep.subr.bf16.mxu1 %v2251_v0  ;;  %v2073_v39 = vld [vmem:[#allocation8 + $0x58] sm:$0xff]   ;;  %v2075_v41 = vld [vmem:[#allocation8 + $0x50] sm:$0xff]   ;;  %v2076_v42 = vld [vmem:[#allocation8 + $0x8] sm:$0xff]  }
  0x3e   :  { %v2077_v43 = vld [vmem:[#allocation8 + $0x48] sm:$0xff]   ;;  %v2078_v44 = vld [vmem:[#allocation8] sm:$0xff]   ;;  %vm2416_vm8 = vmand %vm423_vm5, %vm424_vm6 }
  0x3f   :  { %v2079_v45 = vld [vmem:[#allocation8 + $0x40] sm:$0xff]   ;;  %vm2420_vm11 = vmand %vm423_vm5, %vm429_vm7  ;;  %v2080_v30 = vld [vmem:[#allocation8 + $0xb8] sm:$0xff]  }
  0x40   :  { %1812 = vmatpush3.bf16.msra.mxu0 %v2051_v7  ;;  %1828 = vmatpush3.bf16.msra.mxu1 %v2052_v8  ;;  %v1615_v56 = vld [vmem:[%s2552_s2] ss:$0 sm:$0xff]  ;;  %vm2426_vm13 = vmand %vm451_vm9, %vm452_vm10  ;;  %v2107_v7 = vld [vmem:[#allocation10 + $0xa8] sm:$0xff]  }
  0x41   :  { %1813 = vmatprep.subr.bf16.mxu0 %v2251_v0  ;;  %1829 = vmatprep.subr.bf16.mxu1 %v2251_v0  ;;  %v1616_v58 = vld [vmem:[%s2553_s3] ss:$0 sm:$0xff]  ;;  %vm478_vm14 = vmand %vm477_vm12, %vm413_vm3 }
  0x42   :  { %v426_v3 = vld [vmem:[#allocation2 + $0x4] sm:$0x1]  ;;  %v431_v5 = vld [vmem:[#allocation2] sm:$0x1]  ;;  %v454_v8 = vld [vmem:[#allocation2] sm:$0x2] }
  0x43   :  { %v479_v13 = vld [vmem:[#allocation2] sm:$0x4]  ;;  %vm829_vm3 = vmand %vm828_vm2, %vm452_vm10 }
  0x44   :  { %1814 = vmatpush3.bf16.msra.mxu0 %v2053_v9  ;;  %1830 = vmatpush3.bf16.msra.mxu1 %v2054_v10  ;;  %v2132_v4 = vld [vmem:[#allocation11 + $0xa0] sm:$0xff]  }
  0x45   :  { %1815 = vmatprep.subr.bf16.mxu0 %v2251_v0  ;;  %1831 = vmatprep.subr.bf16.mxu1 %v2251_v0 }
  0x48   :  { %1816 = vmatpush3.bf16.msra.mxu0 %v2055_v11  ;;  %1832 = vmatpush3.bf16.msra.mxu1 %v2056_v12 }
  0x49   :  { %1837 = vmatprep.subr.bf16.mxu0 %v2251_v0  ;;  %1853 = vmatprep.subr.bf16.mxu1 %v2251_v0 }
  0x4b   :  { %1818 = vmatmul.mubr.msk.bf16.vlgmr.msra.gmra.mxu0 %vm165_vm1, %v1592_v14  ;;  %1834 = vmatmul.mubr.msk.bf16.vlgmr.msra.gmra.mxu1 %vm165_vm1, %v101_v15  ;;  %v460_v15 = vld [vmem:[#allocation2 + $0x4] sm:$0x2] }
  0x4c   :  { %1838 = vmatpush3.bf16.msra.mxu0 %v2057_v16  ;;  %1849 = vmatprep.mubr.msk.bf16.mxu0 %vm2252_vm0, %v2251_v0 }
  0x4d   :  { %1839 = vmatprep.subr.bf16.mxu0 %v2251_v0  ;;  %1869 = vmatprep.mubr.msk.bf16.mxu1 %vm2252_vm0, %v2251_v0 }
  0x4e   :  { %1854 = vmatpush3.bf16.msra.mxu1 %v2065_v27 }
  0x4f   :  { %1855 = vmatprep.subr.bf16.mxu1 %v2251_v0 }
  0x50   :  { %1840 = vmatpush3.bf16.msra.mxu0 %v2058_v20 }
  0x51   :  { %1841 = vmatprep.subr.bf16.mxu0 %v2251_v0 }
  0x52   :  { %1856 = vmatpush3.bf16.msra.mxu1 %v2067_v33  ;;  %v2082_v33 = vld [vmem:[#allocation8 + $0xa8] sm:$0xff]  }
  0x53   :  { %1857 = vmatprep.subr.bf16.mxu1 %v2251_v0 }
  0x54   :  { %1842 = vmatpush3.bf16.msra.mxu0 %v2059_v21 }
  0x55   :  { %1843 = vmatprep.subr.bf16.mxu0 %v2251_v0 }
  0x56   :  { %1858 = vmatpush3.bf16.msra.mxu1 %v2069_v35  ;;  %v2084_v35 = vld [vmem:[#allocation8 + $0x98] sm:$0xff]  }
  0x57   :  { %1859 = vmatprep.subr.bf16.mxu1 %v2251_v0 }
  0x58   :  { %1844 = vmatpush3.bf16.msra.mxu0 %v2060_v22 }
  0x59   :  { %1845 = vmatprep.subr.bf16.mxu0 %v2251_v0 }
  0x5a   :  { %1860 = vmatpush3.bf16.msra.mxu1 %v2071_v37 }
  0x5b   :  { %1861 = vmatprep.subr.bf16.mxu1 %v2251_v0 }
  0x5c   :  { %1846 = vmatpush3.bf16.msra.mxu0 %v2061_v23 }
  0x5d   :  { %1847 = vmatprep.subr.bf16.mxu0 %v2251_v0 }
  0x5e   :  { %1862 = vmatpush3.bf16.msra.mxu1 %v2073_v39 }
  0x5f   :  { %1863 = vmatprep.subr.bf16.mxu1 %v2251_v0 }
  0x60   :  { %1848 = vmatpush3.bf16.msra.mxu0 %v2062_v24 }
  0x61   :  { %1873 = vmatprep.subr.bf16.mxu0 %v2251_v0 }
  0x62   :  { %1864 = vmatpush3.bf16.msra.mxu1 %v2075_v41 }
  0x63   :  { %1850 = vmatmul.mubr.msk.bf16.vlgmr.msra.gmra.mxu0 %vm165_vm1, %v314_v25  ;;  %1865 = vmatprep.subr.bf16.mxu1 %v2251_v0  ;;  %vm464_vm1 = vmand %vm451_vm9, %vm463_vm15 }
  0x64   :  { %1889 = vmatprep.mubr.msk.bf16.mxu0 %vm2252_vm0, %v2251_v0  ;;  %1874 = vmatpush3.bf16.msra.mxu0 %v2064_v26 }
  0x65   :  { %1875 = vmatprep.subr.bf16.mxu0 %v2251_v0 }
  0x66   :  { %1866 = vmatpush3.bf16.msra.mxu1 %v2077_v43 }
  0x67   :  { %1867 = vmatprep.subr.bf16.mxu1 %v2251_v0 }
  0x68   :  { %1876 = vmatpush3.bf16.msra.mxu0 %v2066_v32  ;;  %v2081_v32 = vld [vmem:[#allocation8 + $0xb0] sm:$0xff]  }
  0x69   :  { %1877 = vmatprep.subr.bf16.mxu0 %v2251_v0 }
  0x6a   :  { %1868 = vmatpush3.bf16.msra.mxu1 %v2079_v45  ;;  %v2091_v45 = vld [vmem:[#allocation10 + $0x78] sm:$0xff]  }
  0x6b   :  { %1893 = vmatprep.subr.bf16.mxu1 %v2251_v0 }
  0x6c   :  { %1878 = vmatpush3.bf16.msra.mxu0 %v2068_v34  ;;  %v2083_v34 = vld [vmem:[#allocation8 + $0xa0] sm:$0xff]  }
  0x6d   :  { %1879 = vmatprep.subr.bf16.mxu0 %v2251_v0 }
  0x70   :  { %1880 = vmatpush3.bf16.msra.mxu0 %v2070_v36  ;;  %v2085_v36 = vld [vmem:[#allocation8 + $0x90] sm:$0xff]  }
  0x71   :  { %1881 = vmatprep.subr.bf16.mxu0 %v2251_v0 }
  0x74   :  { %1882 = vmatpush3.bf16.msra.mxu0 %v2072_v38  ;;  %v2086_v38 = vld [vmem:[#allocation8 + $0x88] sm:$0xff]  }
  0x75   :  { %1883 = vmatprep.subr.bf16.mxu0 %v2251_v0 }
  0x78   :  { %1884 = vmatpush3.bf16.msra.mxu0 %v2074_v40  ;;  %v2087_v40 = vld [vmem:[#allocation8 + $0x80] sm:$0xff]  }
  0x79   :  { %1885 = vmatprep.subr.bf16.mxu0 %v2251_v0 }
  0x7c   :  { %1886 = vmatpush3.bf16.msra.mxu0 %v2076_v42 }
  0x7d   :  { %1887 = vmatprep.subr.bf16.mxu0 %v2251_v0 }
  0x80   :  { %1888 = vmatpush3.bf16.msra.mxu0 %v2078_v44  ;;  %v2089_v44 = vld [vmem:[#allocation10 + $0x38] sm:$0xff]  }
  0x81   :  { %1913 = vmatprep.subr.bf16.mxu0 %v2251_v0 }
 0x10b   :  { %v203_v46 = vpop.f32.mrf.mxu0  ;;  %v282_v47 = vpop.f32.mrf.mxu1 }
 0x10c   :  { %v283_v54 = vadd.f32 %v282_v47, %v203_v46  ;;  %v2090_v46 = vld [vmem:[#allocation10 + $0x30] sm:$0xff]   ;;  %v2092_v47 = vld [vmem:[#allocation10 + $0x28] sm:$0xff]  }
 0x10d   :  { %v1819_v48 = vpop.f32.mrf.mxu0  ;;  %v1835_v49 = vpop.f32.mrf.mxu1 }
 0x10e   :  { %v2093_v48 = vld [vmem:[#allocation10 + $0x70] sm:$0xff]   ;;  %v2094_v49 = vld [vmem:[#allocation10 + $0x20] sm:$0xff]  }
 0x10f   :  { %v206_v50 = vpop.f32.mrf.mxu0  ;;  %v285_v51 = vpop.f32.mrf.mxu1 }
 0x110   :  { %v830_v50 = vld [vmem:[#allocation3] sm:$0x3] }
 0x111   :  { %v1820_v52 = vpop.f32.mrf.mxu0  ;;  %v1836_v53 = vpop.f32.mrf.mxu1  ;;  %v831_v51 = vsel %vm829_vm3, 0, %v830_v50  ;;  %v2111_v50 = vld [vmem:[#allocation10 + $0x88] sm:$0xff]  }
 0x112   :  { %v833_v52 = vld [vmem:[#allocation3 + $0x2] sm:$0x3]  ;;  %832 = vst [vmem:[#allocation3] sm:$0x3] %v831_v51 }
 0x113   :  { %v834_v53 = vsel %vm829_vm3, 0, %v833_v52  ;;  %v2112_v52 = vld [vmem:[#allocation10 + $0x80] sm:$0xff]  }
 0x114   :  { %835 = vst [vmem:[#allocation3 + $0x2] sm:$0x3] %v834_v53 }
 0x123   :  { %v388_v55 = vpop.f32.mrf.mxu0 }
 0x124   :  { %v394_v57 = vadd.f32 %v388_v55, %v283_v54  ;;  %v2095_v54 = vld [vmem:[#allocation10 + $0x68] sm:$0xff]   ;;  %v2096_v55 = vld [vmem:[#allocation10 + $0x18] sm:$0xff]  }
 0x125   :  { %v1851_v59 = vpop.f32.mrf.mxu0 }
 0x126   :  { %v402_v60 = vmul.f32 %v1615_v56, %v394_v57  ;;  %v2097_v56 = vld [vmem:[#allocation10 + $0x60] sm:$0xff]   ;;  %v2098_v57 = vld [vmem:[#allocation10 + $0x10] sm:$0xff]   ;;  %v2100_v59 = vld [vmem:[#allocation10 + $0x8] sm:$0xff]  }
 0x127   :  { %v391_v61 = vpop.f32.mrf.mxu0 }
 0x128   :  { %v410_v62 = vadd.f32 %v1616_v58, %v402_v60  ;;  %v2099_v58 = vld [vmem:[#allocation10 + $0x58] sm:$0xff]   ;;  %v2101_v60 = vld [vmem:[#allocation10 + $0x50] sm:$0xff]   ;;  %v2102_v61 = vld [vmem:[#allocation10] sm:$0xff]  }
 0x129   :  { %v1852_v63 = vpop.f32.mrf.mxu0 }
 0x12a   :  { %v411_v1 = vmax.f32 %v410_v62, 0.0  ;;  %v2103_v62 = vld [vmem:[#allocation10 + $0x48] sm:$0xff]   ;;  %v2104_v63 = vld [vmem:[#allocation10 + $0x40] sm:$0xff]  }
 0x12c   :  { %v421_v6 = vpack.c.bf16 %v411_v1, %v411_v1 }
 0x12e   :  { %v427_v9 = vsel %vm2416_vm8, %v421_v6, %v426_v3  ;;  %v432_v10 = vsel %vm2420_vm11, %v421_v6, %v431_v5  ;;  %v446_v11 = vshrl.u32 %v421_v6, 16  ;;  %v457_v12 = vrot.slane %v421_v6, 5 }
 0x12f   :  { %428 = vst [vmem:[#allocation2 + $0x4] sm:$0x1] %v427_v9  ;;  %433 = vst [vmem:[#allocation2] sm:$0x1] %v432_v10  ;;  %v438_v17 = vshll.u32 %v421_v6, 16 }
 0x130   :  { %v455_v14 = vsel %vm2426_vm13, %v446_v11, %v454_v8  ;;  %v1621_v16 = vrot.slane %v446_v11, 9  ;;  %v458_v18 = vrot.slane %v457_v12, 4 }
 0x131   :  { %456 = vst [vmem:[#allocation2] sm:$0x2] %v455_v14  ;;  %v1618_v21 = vrot.slane %v438_v17, 9  ;;  %v1620_v26 = vrot.slane %v438_v17, 10  ;;  %v1647_v17 = vld [vmem:[%s2555_s5] ss:$0 sm:$0xff] }
 0x132   :  { %v480_v19 = vsel %vm478_vm14, %v1621_v16, %v479_v13  ;;  %v461_v20 = vsel %vm2426_vm13, %v458_v18, %v460_v15  ;;  %v2253_v13 = vmov 1983009808   ;;  %v848_v15 = vlaneseq }
 0x133   :  { %481 = vst [vmem:[#allocation2] sm:$0x4] %v480_v19  ;;  %462 = vst [vmem:[#allocation2 + $0x4] sm:$0x2] %v461_v20  ;;  %v846_v14 = vunpack.c.l.s4 %v2253_v13  ;;  %v1648_v19 = vld [vmem:[%s2556_s6] ss:$0 sm:$0xff] }
 0x136   :  { %v443_v22 = vld [vmem:[#allocation2 + $0x4] sm:$0x1]  ;;  %v2088_v37 = vld [vmem:[#allocation2] ss:$0 sps:$4 sm:$0x77]  }
 0x137   :  { %v444_v23 = vsel %vm2420_vm11, %v1618_v21, %v443_v22  ;;  %v717_v39 = vshll.u32 %v2088_v37, 16  ;;  %v715_v42 = vshrl.u32 %v2088_v37, 16  ;;  %v847_v22 = vunpack.c.0.s8 %v846_v14 }
 0x138   :  { %445 = vst [vmem:[#allocation2 + $0x4] sm:$0x1] %v444_v23  ;;  %v465_v24 = vld [vmem:[#allocation2] sm:$0x2]  ;;  %v2479_v23 = vshrl.u32 %v848_v15, 7 }
 0x139   :  { %v466_v25 = vsel %vm464_vm1, %v458_v18, %v465_v24  ;;  %v719_v41 = vrot.slane %v717_v39, 1 }
 0x13a   :  { %467 = vst [vmem:[#allocation2] sm:$0x2] %v466_v25  ;;  %v471_v27 = vld [vmem:[#allocation2 + $0x4] sm:$0x2] }
 0x13b   :  { %v472_v28 = vsel %vm464_vm1, %v1620_v26, %v471_v27  ;;  %v720_v43 = vor.u32 %v719_v41, %v715_v42 }
 0x13c   :  { %473 = vst [vmem:[#allocation2 + $0x4] sm:$0x2] %v472_v28  ;;  %v850_v28 = vsub.s32 %v847_v22, %v2479_v23 }
 0x141   :  { %v482_v29 = vld [vmem:[#allocation2] sm:$0x3] }
 0x142   :  { %1890 = vmatmul.mubr.bf16.vlgmr.msra.gmra.mxu0 %v482_v29  ;;  %v838_v29 = vld [vmem:[#allocation3 + $0x2] sm:$0x1] }
 0x143   :  { %1929 = vmatprep.mubr.msk.bf16.mxu0 %vm2252_vm0, %v2251_v0  ;;  %v499_v31 = vld [vmem:[#allocation2 + $0x4] sm:$0x3]  ;;  %1914 = vmatpush3.bf16.msra.mxu0 %v2091_v45  ;;  %v2106_v45 = vld [vmem:[#allocation10 + $0xb0] sm:$0xff]  }
 0x144   :  { %1870 = vmatmul.mubr.bf16.vlgmr.msra.gmra.mxu1 %v499_v31  ;;  %1915 = vmatprep.subr.bf16.mxu0 %v2251_v0 }
 0x145   :  { %1894 = vmatpush3.bf16.msra.mxu1 %v2080_v30  ;;  %1909 = vmatprep.mubr.msk.bf16.mxu1 %vm2252_vm0, %v2251_v0  ;;  %v841_v30 = vld [vmem:[#allocation3] sm:$0x1] }
 0x146   :  { %1895 = vmatprep.subr.bf16.mxu1 %v2251_v0 }
 0x147   :  { %1916 = vmatpush3.bf16.msra.mxu0 %v2093_v48  ;;  %v2110_v48 = vld [vmem:[#allocation10 + $0x90] sm:$0xff]  }
 0x148   :  { %1917 = vmatprep.subr.bf16.mxu0 %v2251_v0 }
 0x149   :  { %1896 = vmatpush3.bf16.msra.mxu1 %v2081_v32 }
 0x14a   :  { %1897 = vmatprep.subr.bf16.mxu1 %v2251_v0 }
 0x14b   :  { %1918 = vmatpush3.bf16.msra.mxu0 %v2095_v54 }
 0x14c   :  { %1919 = vmatprep.subr.bf16.mxu0 %v2251_v0 }
 0x14d   :  { %1898 = vmatpush3.bf16.msra.mxu1 %v2082_v33 }
 0x14e   :  { %1899 = vmatprep.subr.bf16.mxu1 %v2251_v0 }
 0x14f   :  { %1920 = vmatpush3.bf16.msra.mxu0 %v2097_v56  ;;  %v2113_v56 = vld [vmem:[#allocation11 + $0x78] sm:$0xff]  }
 0x150   :  { %1921 = vmatprep.subr.bf16.mxu0 %v2251_v0 }
 0x151   :  { %1900 = vmatpush3.bf16.msra.mxu1 %v2083_v34 }
 0x152   :  { %1901 = vmatprep.subr.bf16.mxu1 %v2251_v0 }
 0x153   :  { %1922 = vmatpush3.bf16.msra.mxu0 %v2099_v58  ;;  %v2115_v58 = vld [vmem:[#allocation11 + $0x70] sm:$0xff]  }
 0x154   :  { %1923 = vmatprep.subr.bf16.mxu0 %v2251_v0 }
 0x155   :  { %1902 = vmatpush3.bf16.msra.mxu1 %v2084_v35  ;;  %v866_v35 = vld [vmem:[#allocation3] sm:$0x2] }
 0x156   :  { %1903 = vmatprep.subr.bf16.mxu1 %v2251_v0 }
 0x157   :  { %1924 = vmatpush3.bf16.msra.mxu0 %v2101_v60  ;;  %v2117_v60 = vld [vmem:[#allocation11 + $0x68] sm:$0xff]  }
 0x158   :  { %1925 = vmatprep.subr.bf16.mxu0 %v2251_v0 }
 0x159   :  { %1904 = vmatpush3.bf16.msra.mxu1 %v2085_v36 }
 0x15a   :  { %1905 = vmatprep.subr.bf16.mxu1 %v2251_v0 }
 0x15b   :  { %1926 = vmatpush3.bf16.msra.mxu0 %v2103_v62  ;;  %v2119_v62 = vld [vmem:[#allocation11 + $0x60] sm:$0xff]  }
 0x15c   :  { %1927 = vmatprep.subr.bf16.mxu0 %v2251_v0 }
 0x15d   :  { %1906 = vmatpush3.bf16.msra.mxu1 %v2086_v38 }
 0x15e   :  { %1907 = vmatprep.subr.bf16.mxu1 %v2251_v0 }
 0x15f   :  { %1928 = vmatpush3.bf16.msra.mxu0 %v2104_v63  ;;  %v2120_v63 = vld [vmem:[#allocation11 + $0x20] sm:$0xff]  }
 0x160   :  { %1953 = vmatprep.subr.bf16.mxu0 %v2251_v0 }
 0x161   :  { %1908 = vmatpush3.bf16.msra.mxu1 %v2087_v40 }
 0x162   :  { %1933 = vmatprep.subr.bf16.mxu1 %v2251_v0 }
 0x164   :  { %1910 = vmatmul.mubr.bf16.vlgmr.msra.gmra.mxu1 %v720_v43  ;;  %v2105_v43 = vld [vmem:[#allocation10 + $0xb8] sm:$0xff]  }
 0x165   :  { %1949 = vmatprep.mubr.msk.bf16.mxu1 %vm2252_vm0, %v2251_v0  ;;  %1934 = vmatpush3.bf16.msra.mxu1 %v2089_v44 }
 0x166   :  { %1935 = vmatprep.subr.bf16.mxu1 %v2251_v0 }
 0x169   :  { %1936 = vmatpush3.bf16.msra.mxu1 %v2090_v46  ;;  %v2108_v46 = vld [vmem:[#allocation10 + $0xa0] sm:$0xff]  }
 0x16a   :  { %1937 = vmatprep.subr.bf16.mxu1 %v2251_v0 }
 0x16d   :  { %1938 = vmatpush3.bf16.msra.mxu1 %v2092_v47  ;;  %v2109_v47 = vld [vmem:[#allocation10 + $0x98] sm:$0xff]  }
 0x16e   :  { %1939 = vmatprep.subr.bf16.mxu1 %v2251_v0 }
 0x171   :  { %1940 = vmatpush3.bf16.msra.mxu1 %v2094_v49 }
 0x172   :  { %1941 = vmatprep.subr.bf16.mxu1 %v2251_v0 }
 0x175   :  { %1942 = vmatpush3.bf16.msra.mxu1 %v2096_v55 }
 0x176   :  { %1943 = vmatprep.subr.bf16.mxu1 %v2251_v0 }
 0x179   :  { %1944 = vmatpush3.bf16.msra.mxu1 %v2098_v57  ;;  %v2114_v57 = vld [vmem:[#allocation11 + $0x38] sm:$0xff]  }
 0x17a   :  { %1945 = vmatprep.subr.bf16.mxu1 %v2251_v0 }
 0x17d   :  { %1946 = vmatpush3.bf16.msra.mxu1 %v2100_v59  ;;  %v2116_v59 = vld [vmem:[#allocation11 + $0x30] sm:$0xff]  }
 0x17e   :  { %1947 = vmatprep.subr.bf16.mxu1 %v2251_v0 }
 0x181   :  { %1948 = vmatpush3.bf16.msra.mxu1 %v2102_v61  ;;  %v2118_v61 = vld [vmem:[#allocation11 + $0x28] sm:$0xff]  }
 0x182   :  { %1973 = vmatprep.subr.bf16.mxu1 %v2251_v0 }
 0x202   :  { %v687_v1 = vpop.f32.mrf.mxu0 }
 0x204   :  { %v1891_v3 = vpop.f32.mrf.mxu0  ;;  %v599_v5 = vpop.f32.mrf.mxu1 }
 0x205   :  { %v688_v12 = vadd.f32 %v687_v1, %v599_v5  ;;  %v2121_v1 = vld [vmem:[#allocation11 + $0x58] sm:$0xff]   ;;  %v2254_v3 = vmov 0  }
 0x206   :  { %v690_v6 = vpop.f32.mrf.mxu0  ;;  %v1871_v8 = vpop.f32.mrf.mxu1  ;;  %1220 = vst [vmem:[#allocation4] sm:$0x1] %v2254_v3  ;;  %1221 = vst [vmem:[#allocation4 + $0x1] sm:$0x1] %v2254_v3  ;;  %v2122_v5 = vld [vmem:[#allocation11 + $0x18] sm:$0xff]  }
 0x207   :  { %v2123_v6 = vld [vmem:[#allocation11 + $0x50] sm:$0xff]  }
 0x208   :  { %v1892_v9 = vpop.f32.mrf.mxu0  ;;  %v602_v10 = vpop.f32.mrf.mxu1  ;;  %v2124_v8 = vld [vmem:[#allocation11 + $0x10] sm:$0xff]  }
 0x209   :  { %v2125_v9 = vld [vmem:[#allocation11 + $0x48] sm:$0xff]  }
 0x20a   :  { %v1872_v11 = vpop.f32.mrf.mxu1  ;;  %v2126_v10 = vld [vmem:[#allocation11 + $0x8] sm:$0xff]  }
 0x20b   :  { %v2127_v11 = vld [vmem:[#allocation11 + $0x40] sm:$0xff]  }
 0x224   :  { %v804_v16 = vpop.f32.mrf.mxu1 }
 0x225   :  { %v810_v18 = vadd.f32 %v804_v16, %v688_v12  ;;  %v2128_v12 = vld [vmem:[#allocation11] sm:$0xff]  }
 0x226   :  { %v1911_v20 = vpop.f32.mrf.mxu1 }
 0x227   :  { %v818_v21 = vmul.f32 %v1647_v17, %v810_v18 }
 0x228   :  { %v807_v24 = vpop.f32.mrf.mxu1 }
 0x229   :  { %v826_v25 = vadd.f32 %v1648_v19, %v818_v21  ;;  %v1676_v24 = vld [vmem:[%s2558_s8] ss:$0 sm:$0xff] }
 0x22a   :  { %v1912_v26 = vpop.f32.mrf.mxu1 }
 0x22b   :  { %v827_v27 = vmax.f32 %v826_v25, 0.0  ;;  %v1677_v26 = vld [vmem:[%s2559_s9] ss:$0 sm:$0xff] }
 0x22d   :  { %v836_v31 = vpack.c.bf16 %v827_v27, %v827_v27 }
 0x22f   :  { %v839_v32 = vsel %vm2416_vm8, %v836_v31, %v838_v29  ;;  %v842_v33 = vsel %vm2420_vm11, %v836_v31, %v841_v30  ;;  %v851_v34 = vrot.slane %v836_v31, %v850_v28 }
 0x230   :  { %840 = vst [vmem:[#allocation3 + $0x2] sm:$0x1] %v839_v32  ;;  %843 = vst [vmem:[#allocation3] sm:$0x1] %v842_v33  ;;  %v1224_v33 = vld [vmem:[#allocation4 + $0x1] sm:$0x1] }
 0x231   :  { %v861_v36 = vshrl.u32 %v851_v34, 16  ;;  %v853_v37 = vshll.u32 %v851_v34, 16  ;;  %v1227_v34 = vld [vmem:[#allocation4] sm:$0x1] }
 0x233   :  { %v867_v38 = vsel %vm2426_vm13, %v861_v36, %v866_v35  ;;  %v1649_v39 = vrot.slane %v853_v37, 9 }
 0x234   :  { %868 = vst [vmem:[#allocation3] sm:$0x2] %v867_v38  ;;  %v2129_v38 = vld [vmem:[#allocation11 + $0xb8] sm:$0xff]  }
 0x237   :  { %v858_v40 = vld [vmem:[#allocation3 + $0x2] sm:$0x1]  ;;  %v869_v41 = vld [vmem:[#allocation3] sm:$0x1] }
 0x238   :  { %v859_v42 = vsel %vm2420_vm11, %v1649_v39, %v858_v40  ;;  %1950 = vmatmul.mubr.bf16.vlgmr.msra.gmra.mxu1 %v869_v41  ;;  %v2130_v41 = vld [vmem:[#allocation11 + $0xb0] sm:$0xff]  }
 0x239   :  { %860 = vst [vmem:[#allocation3 + $0x2] sm:$0x1] %v859_v42  ;;  %1989 = vmatprep.mubr.msk.bf16.mxu1 %vm2252_vm0, %v2251_v0  ;;  %1974 = vmatpush3.bf16.msra.mxu1 %v2113_v56  ;;  %v2131_v42 = vld [vmem:[#allocation11 + $0xa8] sm:$0xff]  }
 0x23a   :  { %1975 = vmatprep.subr.bf16.mxu1 %v2251_v0 }
 0x23b   :  { %v1667_v49 = vld.sshfl [vmem:[#allocation3] sm:$0x3 pattern:$0x76325410] }
 0x23c   :  { %v1109_v51 = vshll.u32 %v1667_v49, 16  ;;  %v1107_v54 = vshrl.u32 %v1667_v49, 16 }
 0x23d   :  { %1976 = vmatpush3.bf16.msra.mxu1 %v2115_v58 }
 0x23e   :  { %v1111_v53 = vrot.slane %v1109_v51, 1  ;;  %1977 = vmatprep.subr.bf16.mxu1 %v2251_v0 }
 0x240   :  { %v886_v44 = vld [vmem:[#allocation3 + $0x2] sm:$0x1]  ;;  %v1112_v55 = vor.u32 %v1111_v53, %v1107_v54 }
 0x241   :  { %1930 = vmatmul.mubr.bf16.vlgmr.msra.gmra.mxu0 %v886_v44  ;;  %1978 = vmatpush3.bf16.msra.mxu1 %v2117_v60 }
 0x242   :  { %1954 = vmatpush3.bf16.msra.mxu0 %v2105_v43  ;;  %1969 = vmatprep.mubr.msk.bf16.mxu0 %vm2252_vm0, %v2251_v0  ;;  %v2255_v43 = vmov 1966171168  }
 0x243   :  { %1955 = vmatprep.subr.bf16.mxu0 %v2251_v0  ;;  %1979 = vmatprep.subr.bf16.mxu1 %v2251_v0  ;;  %v1460_v44 = vunpack.c.l.s4 %v2255_v43 }
 0x245   :  { %1980 = vmatpush3.bf16.msra.mxu1 %v2119_v62  ;;  %v1566_v62 = vld [vmem:[%s2561_s11] sm:$0x1]  ;;  %s2217_s11 = scalar_lea.vmem %s1582_s24, 16 }
 0x246   :  { %1956 = vmatpush3.bf16.msra.mxu0 %v2106_v45  ;;  %1981 = vmatprep.subr.bf16.mxu1 %v2251_v0  ;;  %v2133_v45 = vld [vmem:[#allocation11 + $0x98] sm:$0xff]   ;;  %p2218_p6 = scmp.ne.s32.totalorder %s1582_s24, %s2217_s11  ;;  %p2223_p8 = scmp.lt.s32.totalorder %s2221_s25, %s2217_s11 }
 0x247   :  { %1957 = vmatprep.subr.bf16.mxu0 %v2251_v0 }
 0x248   :  { %p2224_p9 = por %p2223_p8, %p2222_p7 }
 0x249   :  { %1982 = vmatpush3.bf16.msra.mxu1 %v2121_v1 }
 0x24a   :  { %1958 = vmatpush3.bf16.msra.mxu0 %v2107_v7  ;;  %1983 = vmatprep.subr.bf16.mxu1 %v2251_v0  ;;  %v1461_v7 = vunpack.c.0.s8 %v1460_v44  ;;  %p2225_p10 = pnand %p2224_p9, %p2218_p6 }
 0x24b   :  { %1959 = vmatprep.subr.bf16.mxu0 %v2251_v0 }
 0x24d   :  { %1984 = vmatpush3.bf16.msra.mxu1 %v2123_v6 }
 0x24e   :  { %1960 = vmatpush3.bf16.msra.mxu0 %v2108_v46  ;;  %1985 = vmatprep.subr.bf16.mxu1 %v2251_v0  ;;  %v2134_v46 = vld [vmem:[#allocation11 + $0x90] sm:$0xff]  }
 0x24f   :  { %1961 = vmatprep.subr.bf16.mxu0 %v2251_v0 }
 0x251   :  { %1986 = vmatpush3.bf16.msra.mxu1 %v2125_v9 }
 0x252   :  { %1962 = vmatpush3.bf16.msra.mxu0 %v2109_v47  ;;  %1987 = vmatprep.subr.bf16.mxu1 %v2251_v0  ;;  %v1464_v47 = vsub.s32 %v1461_v7, %v2479_v23 }
 0x253   :  { %1963 = vmatprep.subr.bf16.mxu0 %v2251_v0 }
 0x255   :  { %1988 = vmatpush3.bf16.msra.mxu1 %v2127_v11 }
 0x256   :  { %1964 = vmatpush3.bf16.msra.mxu0 %v2110_v48  ;;  %2013 = vmatprep.subr.bf16.mxu1 %v2251_v0  ;;  %v2135_v48 = vld [vmem:[#allocation11 + $0x88] sm:$0xff]  }
 0x257   :  { %1965 = vmatprep.subr.bf16.mxu0 %v2251_v0 }
 0x25a   :  { %1966 = vmatpush3.bf16.msra.mxu0 %v2111_v50  ;;  %v2136_v50 = vld [vmem:[#allocation11 + $0x80] sm:$0xff]  }
 0x25b   :  { %1967 = vmatprep.subr.bf16.mxu0 %v2251_v0 }
 0x25e   :  { %1968 = vmatpush3.bf16.msra.mxu0 %v2112_v52 }
 0x25f   :  { %1993 = vmatprep.subr.bf16.mxu0 %v2251_v0 }
 0x261   :  { %1970 = vmatmul.mubr.bf16.vlgmr.msra.gmra.mxu0 %v1112_v55 }
 0x262   :  { %2009 = vmatprep.mubr.msk.bf16.mxu0 %vm2252_vm0, %v2251_v0  ;;  %1994 = vmatpush3.bf16.msra.mxu0 %v2114_v57 }
 0x263   :  { %1995 = vmatprep.subr.bf16.mxu0 %v2251_v0 }
 0x266   :  { %1996 = vmatpush3.bf16.msra.mxu0 %v2116_v59 }
 0x267   :  { %1997 = vmatprep.subr.bf16.mxu0 %v2251_v0 }
 0x26a   :  { %1998 = vmatpush3.bf16.msra.mxu0 %v2118_v61 }
 0x26b   :  { %1999 = vmatprep.subr.bf16.mxu0 %v2251_v0 }
 0x26e   :  { %2000 = vmatpush3.bf16.msra.mxu0 %v2120_v63 }
 0x26f   :  { %2001 = vmatprep.subr.bf16.mxu0 %v2251_v0 }
 0x272   :  { %2002 = vmatpush3.bf16.msra.mxu0 %v2122_v5 }
 0x273   :  { %2003 = vmatprep.subr.bf16.mxu0 %v2251_v0 }
 0x276   :  { %2004 = vmatpush3.bf16.msra.mxu0 %v2124_v8 }
 0x277   :  { %2005 = vmatprep.subr.bf16.mxu0 %v2251_v0 }
 0x27a   :  { %2006 = vmatpush3.bf16.msra.mxu0 %v2126_v10  ;;  %v1572_v10 = vld [vmem:[#allocation13] sm:$0x1] }
 0x27b   :  { %2007 = vmatprep.subr.bf16.mxu0 %v2251_v0 }
 0x27e   :  { %2008 = vmatpush3.bf16.msra.mxu0 %v2128_v12 }
 0x2f8   :  { %v1074_v13 = vpop.f32.mrf.mxu1 }
 0x2fa   :  { %v1951_v14 = vpop.f32.mrf.mxu1 }
 0x2fc   :  { %v1077_v15 = vpop.f32.mrf.mxu1 }
 0x2fe   :  { %v1952_v16 = vpop.f32.mrf.mxu1 }
 0x301   :  { %v986_v17 = vpop.f32.mrf.mxu0 }
 0x302   :  { %v1075_v21 = vadd.f32 %v1074_v13, %v986_v17 }
 0x303   :  { %v1931_v18 = vpop.f32.mrf.mxu0 }
 0x305   :  { %v989_v19 = vpop.f32.mrf.mxu0 }
 0x307   :  { %v1932_v20 = vpop.f32.mrf.mxu0 }
 0x321   :  { %v1196_v22 = vpop.f32.mrf.mxu0 }
 0x322   :  { %v1202_v25 = vadd.f32 %v1196_v22, %v1075_v21 }
 0x323   :  { %v1971_v27 = vpop.f32.mrf.mxu0 }
 0x324   :  { %v1210_v28 = vmul.f32 %v1676_v24, %v1202_v25 }
 0x325   :  { %v1199_v29 = vpop.f32.mrf.mxu0 }
 0x326   :  { %v1218_v30 = vadd.f32 %v1677_v26, %v1210_v28 }
 0x327   :  { %v1972_v31 = vpop.f32.mrf.mxu0 }
 0x328   :  { %v1219_v32 = vmax.f32 %v1218_v30, 0.0 }
 0x32a   :  { %v1222_v35 = vpack.c.bf16 %v1219_v32, %v1219_v32 }
 0x32c   :  { %v1225_v36 = vsel %vm2416_vm8, %v1222_v35, %v1224_v33  ;;  %v1228_v37 = vsel %vm2420_vm11, %v1222_v35, %v1227_v34 }
 0x32d   :  { %1226 = vst [vmem:[#allocation4 + $0x1] sm:$0x1] %v1225_v36  ;;  %1229 = vst [vmem:[#allocation4] sm:$0x1] %v1228_v37 }
 0x334   :  { %v1247_v39 = vld [vmem:[#allocation4 + $0x1] sm:$0x1]  ;;  %v1230_v40 = vld [vmem:[#allocation4] sm:$0x1] }
 0x335   :  { %1990 = vmatmul.mubr.bf16.vlgmr.msra.gmra.mxu1 %v1247_v39  ;;  %2010 = vmatmul.mubr.bf16.vlgmr.msra.gmra.mxu0 %v1230_v40  ;;  %v1465_v49 = vrot.slane %v1230_v40, %v1464_v47 }
 0x336   :  { %2014 = vmatpush3.bf16.msra.mxu1 %v2129_v38  ;;  %2029 = vmatprep.mubr.msk.bf16.mxu1 %vm2252_vm0, %v2251_v0 }
 0x337   :  { %2015 = vmatprep.subr.bf16.mxu1 %v2251_v0  ;;  %v1472_v51 = vrot.slane %v1465_v49, %v1464_v47 }
 0x339   :  { %v1474_v52 = vshrl.u32 %v1472_v51, 16 }
 0x33a   :  { %2016 = vmatpush3.bf16.msra.mxu1 %v2130_v41 }
 0x33b   :  { %2017 = vmatprep.subr.bf16.mxu1 %v2251_v0 }
 0x33e   :  { %2018 = vmatpush3.bf16.msra.mxu1 %v2131_v42 }
 0x33f   :  { %2019 = vmatprep.subr.bf16.mxu1 %v2251_v0 }
 0x342   :  { %2020 = vmatpush3.bf16.msra.mxu1 %v2132_v4 }
 0x343   :  { %2021 = vmatprep.subr.bf16.mxu1 %v2251_v0 }
 0x346   :  { %2022 = vmatpush3.bf16.msra.mxu1 %v2133_v45 }
 0x347   :  { %2023 = vmatprep.subr.bf16.mxu1 %v2251_v0 }
 0x34a   :  { %2024 = vmatpush3.bf16.msra.mxu1 %v2134_v46 }
 0x34b   :  { %2025 = vmatprep.subr.bf16.mxu1 %v2251_v0 }
 0x34e   :  { %2026 = vmatpush3.bf16.msra.mxu1 %v2135_v48 }
 0x34f   :  { %2027 = vmatprep.subr.bf16.mxu1 %v2251_v0  ;;  %v1568_v0 = vld [vmem:[%s2562_s12] sm:$0x1] }
 0x352   :  { %2028 = vmatpush3.bf16.msra.mxu1 %v2136_v50 }
 0x355   :  { %2030 = vmatmul.mubr.bf16.vlgmr.msra.gmra.mxu1 %v1474_v52 }
 0x3f5   :  { %v1347_v53 = vpop.f32.mrf.mxu1  ;;  %v1435_v54 = vpop.f32.mrf.mxu0 }
 0x3f6   :  { %v1436_v60 = vadd.f32 %v1435_v54, %v1347_v53 }
 0x3f7   :  { %v1991_v55 = vpop.f32.mrf.mxu1  ;;  %v2011_v56 = vpop.f32.mrf.mxu0 }
 0x3f9   :  { %v1350_v23 = vpop.f32.mrf.mxu1  ;;  %v1438_v57 = vpop.f32.mrf.mxu0 }
 0x3fb   :  { %v1992_v58 = vpop.f32.mrf.mxu1  ;;  %v2012_v59 = vpop.f32.mrf.mxu0 }
 0x415   :  { %v1559_v61 = vpop.f32.mrf.mxu1 }
 0x416   :  { %v1565_v63 = vadd.f32 %v1559_v61, %v1436_v60 }
 0x417   :  { %v2031_v1 = vpop.f32.mrf.mxu1 }
 0x418   :  { %v1567_v3 = vmul.f32 %v1566_v62, %v1565_v63 }
 0x419   :  { %v1562_v5 = vpop.f32.mrf.mxu1 }
 0x41a   :  { %v1569_v6 = vadd.f32 %v1568_v0, %v1567_v3 }
 0x41b   :  { %v2032_v8 = vpop.f32.mrf.mxu1 }
 0x41c   :  { %v1570_v9 = vmax.f32 %v1569_v6, 0.0 }
 0x41e   :  { %v1571_v11 = vpack.c.bf16 %v1570_v9, %v1570_v9 }
 0x420   :  { %v1573_v12 = vsel %vm2416_vm8, %v1571_v11, %v1572_v10 }
 0x421   :  { %1574 = vst [vmem:[#allocation13] sm:$0x1] %v1573_v12 }
 0x422   :  { %2228 = shalt.err (!%p2225_p10)
}
 0x423   :  { %1584 = dma.vmem_to_hbm [thread:$0]  %s1582_s24, 16, %s2563_s13, [#allocation7]  }
 0x424   :  { %2243 = dma.done.wait [#allocation7], 16  }
 0x425   :  { %2244 = vsyncadd [#allocation7], 4294967280 }
 0x426   :  { %1588 = vsyncpa [#allocation6], 1 }
 0x427   :  { %1589 = vsyncpa [#allocation9], 1 }
 0x428   :  { %1590 = vsyncpa [#allocation12], 1 }
 0x429   :  { %1591 = vsyncpa [#allocation7], 1 }

</bundles_post_ra>
